<compile_context>
chip_gen: v6e
topology: v6e:2x2x1
jax: 0.10.0
libtpu: 0.0.40
codegen_flags: <defaults>
</compile_context>

<pallas_src>
import numpy as np

import jax
import jax.numpy as jnp
from jax.experimental import pallas as pl
from jax.experimental.pallas import tpu as pltpu

EPS = 1e-5
PAD = 128  # lane slack on each side of the flattened slab (>= W + 3)


def _round_up(x, m):
    return (x + m - 1) // m * m


def _make_residual_kernel(N, H, W, Cout_p, S_p, use_1x1conv):
    Wp = W + 2
    inv_count = 1.0 / float(N * H * W)

    def conv3x3(src_ref, w_ref):
        # 3x3 conv = 9 MXU matmuls on constant-offset shifted slabs.
        acc = None
        for k in range(9):
            dy, dx = divmod(k, 3)
            s = (dy - 1) * Wp + (dx - 1)
            patch = src_ref[:, PAD + s:PAD + s + S_p]            # (Cin_p, S_p)
            t = jnp.dot(w_ref[k], patch, preferred_element_type=jnp.float32)
            acc = t if acc is None else acc + t
        return acc                                                # (Cout_p, S_p)

    def bn_affine(y, mask, g_ref, beta_ref):
        # Training-mode BN over the N*H*W interior positions only (mask zeroes
        # the padding ring / alignment tail), folded into per-channel
        # (scale, shift).  var = E[y^2] - E[y]^2 shares one masked slab copy.
        ym = y * mask                                             # (C, S_p)
        m = jnp.sum(ym, axis=1, keepdims=True) * inv_count        # (C, 1)
        sq = jnp.sum(ym * y, axis=1, keepdims=True) * inv_count   # (C, 1)
        v = sq - m * m
        scale = g_ref[...] * jax.lax.rsqrt(v + EPS)               # (C, 1)
        shift = beta_ref[...] - m * scale                         # (C, 1)
        return scale, shift

    def kernel(*refs):
        if use_1x1conv:
            (x_ref, mask_ref, w1_ref, g1_ref, be1_ref,
             w2_ref, g2_ref, be2_ref, w3_ref, b3_ref,
             out_ref, ypad_ref) = refs
        else:
            (x_ref, mask_ref, w1_ref, g1_ref, be1_ref,
             w2_ref, g2_ref, be2_ref,
             out_ref, ypad_ref) = refs

        mask = mask_ref[...]                                      # (1, S_p)

        # conv1 (bias cancelled by BN1) -> BN1 affine
        y = conv3x3(x_ref, w1_ref)
        sc1, sh1 = bn_affine(y, mask, g1_ref, be1_ref)

        # Stage the intermediate for conv2's shifted reads: zero only the two
        # 128-lane slack stripes, then one aligned dense interior store with
        # the BN1 affine + ReLU + padding-ring mask fused in.
        ypad_ref[:, :PAD] = jnp.zeros((Cout_p, PAD), jnp.float32)
        ypad_ref[:, PAD + S_p:] = jnp.zeros((Cout_p, PAD), jnp.float32)
        ypad_ref[:, PAD:PAD + S_p] = jnp.maximum(y * sc1 + sh1, 0.0) * mask

        # conv2 (bias cancelled by BN2) -> BN2 affine
        y2 = conv3x3(ypad_ref, w2_ref)
        sc2, sh2 = bn_affine(y2, mask, g2_ref, be2_ref)
        y2 = y2 * sc2 + sh2

        # Per the PyTorch module: residual add happens ONLY when conv3 exists.
        if use_1x1conv:
            y2 = y2 + jnp.dot(w3_ref[...], x_ref[:, PAD:PAD + S_p],
                              preferred_element_type=jnp.float32) + b3_ref[...]

        out_ref[...] = jnp.maximum(y2, 0.0)       # dense, lane-dense store

    return kernel


def _conv_w(w, cout_p, cin_p):
    # PyTorch OIHW (Cout, Cin, 3, 3) -> (9, Cout_p, Cin_p), k = ky*3 + kx.
    co, ci = w.shape[0], w.shape[1]
    w9 = jnp.transpose(w, (2, 3, 0, 1)).reshape(9, co, ci).astype(jnp.float32)
    return jnp.pad(w9, ((0, 0), (0, cout_p - co), (0, cin_p - ci)))


def _col(v, cp):
    v = v.reshape(-1, 1).astype(jnp.float32)
    return jnp.pad(v, ((0, cp - v.shape[0]), (0, 0)))             # (C_p, 1)


def residual_pallas(x_nchw, params, use_1x1conv):
    N, Cin, H, W = x_nchw.shape
    Cout = params["w1"].shape[0]
    Cin_p, Cout_p = _round_up(Cin, 8), _round_up(Cout, 8)
    S = N * (H + 2) * (W + 2)           # flattened padded-spatial length
    S_p = _round_up(S, 128)             # lane-dense slab width
    T = PAD + S_p + PAD                 # slab width incl. shift slack

    # Channel-major, spatially zero-padded, flattened, zero slack on both ends.
    xp = jnp.pad(x_nchw.astype(jnp.float32),
                 ((0, 0), (0, Cin_p - Cin), (1, 1), (1, 1)))
    xslab = jnp.transpose(xp, (1, 0, 2, 3)).reshape(Cin_p, S)
    xslab = jnp.pad(xslab, ((0, 0), (PAD, T - PAD - S)))

    # Interior-position mask: compile-time constant built with numpy.
    m_np = np.zeros((N, H + 2, W + 2), np.float32)
    m_np[:, 1:H + 1, 1:W + 1] = 1.0
    mask_np = np.zeros((1, S_p), np.float32)
    mask_np[0, :S] = m_np.reshape(-1)
    mask = jnp.asarray(mask_np)

    inputs = [
        xslab, mask,
        _conv_w(params["w1"], Cout_p, Cin_p),
        _col(params["g1"], Cout_p), _col(params["beta1"], Cout_p),
        _conv_w(params["w2"], Cout_p, Cout_p),
        _col(params["g2"], Cout_p), _col(params["beta2"], Cout_p),
    ]
    if use_1x1conv:
        w3 = params["w3"][:, :, 0, 0].astype(jnp.float32)
        inputs += [jnp.pad(w3, ((0, Cout_p - Cout), (0, Cin_p - Cin))),
                   _col(params["b3"], Cout_p)]

    kernel = _make_residual_kernel(N, H, W, Cout_p, S_p, use_1x1conv)
    out2d = pl.pallas_call(
        kernel,
        out_shape=jax.ShapeDtypeStruct((Cout_p, S_p), jnp.float32),
        in_specs=[pl.BlockSpec(memory_space=pltpu.MemorySpace.VMEM)] * len(inputs),
        out_specs=pl.BlockSpec(memory_space=pltpu.MemorySpace.VMEM),
        scratch_shapes=[pltpu.VMEM((Cout_p, T), jnp.float32)],
        compiler_params=pltpu.CompilerParams(vmem_limit_bytes=32 * 1024 * 1024),
    )(*inputs)

    # Strip channel/spatial padding; layout plumbing stays in the wrapper.
    out = out2d[:Cout, :S].reshape(Cout, N, H + 2, W + 2)[:, :, 1:H + 1, 1:W + 1]
    return jnp.transpose(out, (1, 0, 2, 3))                      # NCHW


def residual_ref(x, params, use_1x1conv):
    """Pure-JAX reference mirroring the PyTorch forward (training-mode BN)."""
    def conv(x, w, b, pad):
        y = jax.lax.conv_general_dilated(
            x, w, window_strides=(1, 1), padding=((pad, pad), (pad, pad)),
            dimension_numbers=("NCHW", "OIHW", "NCHW"))
        return y + b[None, :, None, None]

    def bn(y, g, beta):
        m = jnp.mean(y, axis=(0, 2, 3), keepdims=True)
        v = jnp.mean((y - m) ** 2, axis=(0, 2, 3), keepdims=True)
        return ((y - m) / jnp.sqrt(v + EPS) * g[None, :, None, None]
                + beta[None, :, None, None])

    y = jax.nn.relu(bn(conv(x, params["w1"], params["b1"], 1),
                       params["g1"], params["beta1"]))
    y = bn(conv(y, params["w2"], params["b2"], 1), params["g2"], params["beta2"])
    if use_1x1conv:
        y = y + conv(x, params["w3"], params["b3"], 0)
    return jax.nn.relu(y)


def make_params(key, cin, cout, use_1x1conv):
    ks = jax.random.split(key, 6)
    p = {
        "w1": 0.1 * jax.random.normal(ks[0], (cout, cin, 3, 3), jnp.float32),
        "b1": 0.1 * jax.random.normal(ks[1], (cout,), jnp.float32),
        "w2": 0.1 * jax.random.normal(ks[2], (cout, cout, 3, 3), jnp.float32),
        "b2": 0.1 * jax.random.normal(ks[3], (cout,), jnp.float32),
        "g1": jnp.ones((cout,), jnp.float32),
        "beta1": jnp.zeros((cout,), jnp.float32),
        "g2": jnp.ones((cout,), jnp.float32),
        "beta2": jnp.zeros((cout,), jnp.float32),
    }
    if use_1x1conv:
        p["w3"] = 0.1 * jax.random.normal(ks[4], (cout, cin, 1, 1), jnp.float32)
        p["b3"] = 0.1 * jax.random.normal(ks[5], (cout,), jnp.float32)
    return p


if __name__ == "__main__":
    key = jax.random.PRNGKey(0)
    kx, kp1, kp2 = jax.random.split(key, 3)

    N, H, W = 2, 16, 16
    configs = [
        (4, 8, True, kp1),    # channel-changing block with 1x1-conv shortcut
        (4, 4, False, kp2),   # plain block (no conv3 -> no residual add, per module)
    ]

    ok = True
    for cin, cout, use_1x1conv, kp in configs:
        x = jax.random.normal(kx, (N, cin, H, W), jnp.float32)
        params = make_params(kp, cin, cout, use_1x1conv)

        out = jax.block_until_ready(residual_pallas(x, params, use_1x1conv))
        ref = residual_ref(x, params, use_1x1conv)
        if not bool(jnp.allclose(out, ref, atol=1e-3, rtol=1e-3)):
            ok = False

    if ok:
        print("KERNEL_OK")
</pallas_src>

<mosaic_0001>
module attributes {stable_mosaic.version = 11 : i64} {
  func.func @kernel(%arg0: memref<8x1024xf32, #tpu.memory_space<vmem>>, %arg1: memref<1x768xf32, #tpu.memory_space<vmem>>, %arg2: memref<9x8x8xf32, #tpu.memory_space<vmem>>, %arg3: memref<8x1xf32, #tpu.memory_space<vmem>>, %arg4: memref<8x1xf32, #tpu.memory_space<vmem>>, %arg5: memref<9x8x8xf32, #tpu.memory_space<vmem>>, %arg6: memref<8x1xf32, #tpu.memory_space<vmem>>, %arg7: memref<8x1xf32, #tpu.memory_space<vmem>>, %arg8: memref<8x8xf32, #tpu.memory_space<vmem>>, %arg9: memref<8x1xf32, #tpu.memory_space<vmem>>, %arg10: memref<8x768xf32, #tpu.memory_space<vmem>>, %arg11: memref<8x1024xf32, #tpu.memory_space<vmem>>) attributes {dimension_semantics = [], scalar_prefetch = 0 : i64, scratch_operands = 1 : i64, tpu.core_type = #tpu.core_type<tc>} {
    %c0 = arith.constant 0 : index
    %c0_0 = arith.constant 0 : index
    %0 = vector.load %arg1[%c0, %c0_0] : memref<1x768xf32, #tpu.memory_space<vmem>>, vector<1x768xf32>
    %c0_1 = arith.constant 0 : index
    %c109 = arith.constant 109 : index
    %1 = vector.load %arg0[%c0_1, %c109] : memref<8x1024xf32, #tpu.memory_space<vmem>>, vector<8x768xf32>
    %c0_2 = arith.constant 0 : index
    %c0_3 = arith.constant 0 : index
    %c0_4 = arith.constant 0 : index
    %2 = vector.load %arg2[%c0_2, %c0_3, %c0_4] : memref<9x8x8xf32, #tpu.memory_space<vmem>>, vector<1x8x8xf32>
    %3 = vector.shape_cast %2 : vector<1x8x8xf32> to vector<8x8xf32>
    %cst = arith.constant dense<0.000000e+00> : vector<8x768xf32>
    %4 = tpu.matmul %3, %1, %cst {dimension_numbers = #tpu.dot_dimension_numbers<[1], [0], [0], [1], [0, 0, 1, 1], [], []>} : vector<8x8xf32>, vector<8x768xf32>, vector<8x768xf32> -> vector<8x768xf32>
    %c0_5 = arith.constant 0 : index
    %c110 = arith.constant 110 : index
    %5 = vector.load %arg0[%c0_5, %c110] : memref<8x1024xf32, #tpu.memory_space<vmem>>, vector<8x768xf32>
    %c1 = arith.constant 1 : index
    %c0_6 = arith.constant 0 : index
    %c0_7 = arith.constant 0 : index
    %6 = vector.load %arg2[%c1, %c0_6, %c0_7] : memref<9x8x8xf32, #tpu.memory_space<vmem>>, vector<1x8x8xf32>
    %7 = vector.shape_cast %6 : vector<1x8x8xf32> to vector<8x8xf32>
    %cst_8 = arith.constant dense<0.000000e+00> : vector<8x768xf32>
    %8 = tpu.matmul %7, %5, %cst_8 {dimension_numbers = #tpu.dot_dimension_numbers<[1], [0], [0], [1], [0, 0, 1, 1], [], []>} : vector<8x8xf32>, vector<8x768xf32>, vector<8x768xf32> -> vector<8x768xf32>
    %9 = arith.addf %4, %8 : vector<8x768xf32>
    %c0_9 = arith.constant 0 : index
    %c111 = arith.constant 111 : index
    %10 = vector.load %arg0[%c0_9, %c111] : memref<8x1024xf32, #tpu.memory_space<vmem>>, vector<8x768xf32>
    %c2 = arith.constant 2 : index
    %c0_10 = arith.constant 0 : index
    %c0_11 = arith.constant 0 : index
    %11 = vector.load %arg2[%c2, %c0_10, %c0_11] : memref<9x8x8xf32, #tpu.memory_space<vmem>>, vector<1x8x8xf32>
    %12 = vector.shape_cast %11 : vector<1x8x8xf32> to vector<8x8xf32>
    %cst_12 = arith.constant dense<0.000000e+00> : vector<8x768xf32>
    %13 = tpu.matmul %12, %10, %cst_12 {dimension_numbers = #tpu.dot_dimension_numbers<[1], [0], [0], [1], [0, 0, 1, 1], [], []>} : vector<8x8xf32>, vector<8x768xf32>, vector<8x768xf32> -> vector<8x768xf32>
    %14 = arith.addf %9, %13 : vector<8x768xf32>
    %c0_13 = arith.constant 0 : index
    %c127 = arith.constant 127 : index
    %15 = vector.load %arg0[%c0_13, %c127] : memref<8x1024xf32, #tpu.memory_space<vmem>>, vector<8x768xf32>
    %c3 = arith.constant 3 : index
    %c0_14 = arith.constant 0 : index
    %c0_15 = arith.constant 0 : index
    %16 = vector.load %arg2[%c3, %c0_14, %c0_15] : memref<9x8x8xf32, #tpu.memory_space<vmem>>, vector<1x8x8xf32>
    %17 = vector.shape_cast %16 : vector<1x8x8xf32> to vector<8x8xf32>
    %cst_16 = arith.constant dense<0.000000e+00> : vector<8x768xf32>
    %18 = tpu.matmul %17, %15, %cst_16 {dimension_numbers = #tpu.dot_dimension_numbers<[1], [0], [0], [1], [0, 0, 1, 1], [], []>} : vector<8x8xf32>, vector<8x768xf32>, vector<8x768xf32> -> vector<8x768xf32>
    %19 = arith.addf %14, %18 : vector<8x768xf32>
    %c0_17 = arith.constant 0 : index
    %c128 = arith.constant 128 : index
    %20 = vector.load %arg0[%c0_17, %c128] : memref<8x1024xf32, #tpu.memory_space<vmem>>, vector<8x768xf32>
    %c4 = arith.constant 4 : index
    %c0_18 = arith.constant 0 : index
    %c0_19 = arith.constant 0 : index
    %21 = vector.load %arg2[%c4, %c0_18, %c0_19] : memref<9x8x8xf32, #tpu.memory_space<vmem>>, vector<1x8x8xf32>
    %22 = vector.shape_cast %21 : vector<1x8x8xf32> to vector<8x8xf32>
    %cst_20 = arith.constant dense<0.000000e+00> : vector<8x768xf32>
    %23 = tpu.matmul %22, %20, %cst_20 {dimension_numbers = #tpu.dot_dimension_numbers<[1], [0], [0], [1], [0, 0, 1, 1], [], []>} : vector<8x8xf32>, vector<8x768xf32>, vector<8x768xf32> -> vector<8x768xf32>
    %24 = arith.addf %19, %23 : vector<8x768xf32>
    %c0_21 = arith.constant 0 : index
    %c129 = arith.constant 129 : index
    %25 = vector.load %arg0[%c0_21, %c129] : memref<8x1024xf32, #tpu.memory_space<vmem>>, vector<8x768xf32>
    %c5 = arith.constant 5 : index
    %c0_22 = arith.constant 0 : index
    %c0_23 = arith.constant 0 : index
    %26 = vector.load %arg2[%c5, %c0_22, %c0_23] : memref<9x8x8xf32, #tpu.memory_space<vmem>>, vector<1x8x8xf32>
    %27 = vector.shape_cast %26 : vector<1x8x8xf32> to vector<8x8xf32>
    %cst_24 = arith.constant dense<0.000000e+00> : vector<8x768xf32>
    %28 = tpu.matmul %27, %25, %cst_24 {dimension_numbers = #tpu.dot_dimension_numbers<[1], [0], [0], [1], [0, 0, 1, 1], [], []>} : vector<8x8xf32>, vector<8x768xf32>, vector<8x768xf32> -> vector<8x768xf32>
    %29 = arith.addf %24, %28 : vector<8x768xf32>
    %c0_25 = arith.constant 0 : index
    %c145 = arith.constant 145 : index
    %30 = vector.load %arg0[%c0_25, %c145] : memref<8x1024xf32, #tpu.memory_space<vmem>>, vector<8x768xf32>
    %c6 = arith.constant 6 : index
    %c0_26 = arith.constant 0 : index
    %c0_27 = arith.constant 0 : index
    %31 = vector.load %arg2[%c6, %c0_26, %c0_27] : memref<9x8x8xf32, #tpu.memory_space<vmem>>, vector<1x8x8xf32>
    %32 = vector.shape_cast %31 : vector<1x8x8xf32> to vector<8x8xf32>
    %cst_28 = arith.constant dense<0.000000e+00> : vector<8x768xf32>
    %33 = tpu.matmul %32, %30, %cst_28 {dimension_numbers = #tpu.dot_dimension_numbers<[1], [0], [0], [1], [0, 0, 1, 1], [], []>} : vector<8x8xf32>, vector<8x768xf32>, vector<8x768xf32> -> vector<8x768xf32>
    %34 = arith.addf %29, %33 : vector<8x768xf32>
    %c0_29 = arith.constant 0 : index
    %c146 = arith.constant 146 : index
    %35 = vector.load %arg0[%c0_29, %c146] : memref<8x1024xf32, #tpu.memory_space<vmem>>, vector<8x768xf32>
    %c7 = arith.constant 7 : index
    %c0_30 = arith.constant 0 : index
    %c0_31 = arith.constant 0 : index
    %36 = vector.load %arg2[%c7, %c0_30, %c0_31] : memref<9x8x8xf32, #tpu.memory_space<vmem>>, vector<1x8x8xf32>
    %37 = vector.shape_cast %36 : vector<1x8x8xf32> to vector<8x8xf32>
    %cst_32 = arith.constant dense<0.000000e+00> : vector<8x768xf32>
    %38 = tpu.matmul %37, %35, %cst_32 {dimension_numbers = #tpu.dot_dimension_numbers<[1], [0], [0], [1], [0, 0, 1, 1], [], []>} : vector<8x8xf32>, vector<8x768xf32>, vector<8x768xf32> -> vector<8x768xf32>
    %39 = arith.addf %34, %38 : vector<8x768xf32>
    %c0_33 = arith.constant 0 : index
    %c147 = arith.constant 147 : index
    %40 = vector.load %arg0[%c0_33, %c147] : memref<8x1024xf32, #tpu.memory_space<vmem>>, vector<8x768xf32>
    %c8 = arith.constant 8 : index
    %c0_34 = arith.constant 0 : index
    %c0_35 = arith.constant 0 : index
    %41 = vector.load %arg2[%c8, %c0_34, %c0_35] : memref<9x8x8xf32, #tpu.memory_space<vmem>>, vector<1x8x8xf32>
    %42 = vector.shape_cast %41 : vector<1x8x8xf32> to vector<8x8xf32>
    %cst_36 = arith.constant dense<0.000000e+00> : vector<8x768xf32>
    %43 = tpu.matmul %42, %40, %cst_36 {dimension_numbers = #tpu.dot_dimension_numbers<[1], [0], [0], [1], [0, 0, 1, 1], [], []>} : vector<8x8xf32>, vector<8x768xf32>, vector<8x768xf32> -> vector<8x768xf32>
    %44 = arith.addf %39, %43 : vector<8x768xf32>
    %45 = vector.broadcast %0 : vector<1x768xf32> to vector<8x768xf32>
    %46 = arith.mulf %44, %45 : vector<8x768xf32>
    %cst_37 = arith.constant dense<0.000000e+00> : vector<8xf32>
    %47 = vector.multi_reduction <add>, %46, %cst_37 [1] : vector<8x768xf32> to vector<8xf32>
    %48 = vector.shape_cast %47 : vector<8xf32> to vector<8x1xf32>
    %cst_38 = arith.constant 0.001953125 : f32
    %49 = vector.broadcast %cst_38 : f32 to vector<8x1xf32>
    %50 = arith.mulf %48, %49 : vector<8x1xf32>
    %51 = arith.mulf %46, %44 : vector<8x768xf32>
    %cst_39 = arith.constant dense<0.000000e+00> : vector<8xf32>
    %52 = vector.multi_reduction <add>, %51, %cst_39 [1] : vector<8x768xf32> to vector<8xf32>
    %53 = vector.shape_cast %52 : vector<8xf32> to vector<8x1xf32>
    %cst_40 = arith.constant 0.001953125 : f32
    %54 = vector.broadcast %cst_40 : f32 to vector<8x1xf32>
    %55 = arith.mulf %53, %54 : vector<8x1xf32>
    %56 = arith.mulf %50, %50 : vector<8x1xf32>
    %57 = arith.subf %55, %56 : vector<8x1xf32>
    %c0_41 = arith.constant 0 : index
    %c0_42 = arith.constant 0 : index
    %58 = vector.load %arg3[%c0_41, %c0_42] : memref<8x1xf32, #tpu.memory_space<vmem>>, vector<8x1xf32>
    %cst_43 = arith.constant 9.99999974E-6 : f32
    %59 = vector.broadcast %cst_43 : f32 to vector<8x1xf32>
    %60 = arith.addf %57, %59 : vector<8x1xf32>
    %61 = math.rsqrt %60 : vector<8x1xf32>
    %62 = arith.mulf %58, %61 : vector<8x1xf32>
    %c0_44 = arith.constant 0 : index
    %c0_45 = arith.constant 0 : index
    %63 = vector.load %arg4[%c0_44, %c0_45] : memref<8x1xf32, #tpu.memory_space<vmem>>, vector<8x1xf32>
    %64 = arith.mulf %50, %62 : vector<8x1xf32>
    %65 = arith.subf %63, %64 : vector<8x1xf32>
    %cst_46 = arith.constant 0.000000e+00 : f32
    %66 = vector.broadcast %cst_46 : f32 to vector<8x128xf32>
    %c0_47 = arith.constant 0 : index
    %c0_48 = arith.constant 0 : index
    %67 = vector.load %arg11[%c0_47, %c0_48] : memref<8x1024xf32, #tpu.memory_space<vmem>>, vector<8x128xf32>
    tpu.vector_store %arg11[%c0_47, %c0_48], %66 {strides = array<i32>} : memref<8x1024xf32, #tpu.memory_space<vmem>>, vector<8x128xf32>,
    %cst_49 = arith.constant 0.000000e+00 : f32
    %68 = vector.broadcast %cst_49 : f32 to vector<8x128xf32>
    %c0_50 = arith.constant 0 : index
    %c896 = arith.constant 896 : index
    %69 = vector.load %arg11[%c0_50, %c896] : memref<8x1024xf32, #tpu.memory_space<vmem>>, vector<8x128xf32>
    tpu.vector_store %arg11[%c0_50, %c896], %68 {strides = array<i32>} : memref<8x1024xf32, #tpu.memory_space<vmem>>, vector<8x128xf32>,
    %70 = vector.broadcast %62 : vector<8x1xf32> to vector<8x768xf32>
    %71 = arith.mulf %44, %70 : vector<8x768xf32>
    %72 = vector.broadcast %65 : vector<8x1xf32> to vector<8x768xf32>
    %73 = arith.addf %71, %72 : vector<8x768xf32>
    %cst_51 = arith.constant 0.000000e+00 : f32
    %74 = vector.broadcast %cst_51 : f32 to vector<8x768xf32>
    %75 = arith.maximumf %73, %74 : vector<8x768xf32>
    %76 = vector.broadcast %0 : vector<1x768xf32> to vector<8x768xf32>
    %77 = arith.mulf %75, %76 : vector<8x768xf32>
    %c0_52 = arith.constant 0 : index
    %c128_53 = arith.constant 128 : index
    %78 = vector.load %arg11[%c0_52, %c128_53] : memref<8x1024xf32, #tpu.memory_space<vmem>>, vector<8x768xf32>
    tpu.vector_store %arg11[%c0_52, %c128_53], %77 {strides = array<i32>} : memref<8x1024xf32, #tpu.memory_space<vmem>>, vector<8x768xf32>,
    %c0_54 = arith.constant 0 : index
    %c109_55 = arith.constant 109 : index
    %79 = vector.load %arg11[%c0_54, %c109_55] : memref<8x1024xf32, #tpu.memory_space<vmem>>, vector<8x768xf32>
    %c0_56 = arith.constant 0 : index
    %c0_57 = arith.constant 0 : index
    %c0_58 = arith.constant 0 : index
    %80 = vector.load %arg5[%c0_56, %c0_57, %c0_58] : memref<9x8x8xf32, #tpu.memory_space<vmem>>, vector<1x8x8xf32>
    %81 = vector.shape_cast %80 : vector<1x8x8xf32> to vector<8x8xf32>
    %cst_59 = arith.constant dense<0.000000e+00> : vector<8x768xf32>
    %82 = tpu.matmul %81, %79, %cst_59 {dimension_numbers = #tpu.dot_dimension_numbers<[1], [0], [0], [1], [0, 0, 1, 1], [], []>} : vector<8x8xf32>, vector<8x768xf32>, vector<8x768xf32> -> vector<8x768xf32>
    %c0_60 = arith.constant 0 : index
    %c110_61 = arith.constant 110 : index
    %83 = vector.load %arg11[%c0_60, %c110_61] : memref<8x1024xf32, #tpu.memory_space<vmem>>, vector<8x768xf32>
    %c1_62 = arith.constant 1 : index
    %c0_63 = arith.constant 0 : index
    %c0_64 = arith.constant 0 : index
    %84 = vector.load %arg5[%c1_62, %c0_63, %c0_64] : memref<9x8x8xf32, #tpu.memory_space<vmem>>, vector<1x8x8xf32>
    %85 = vector.shape_cast %84 : vector<1x8x8xf32> to vector<8x8xf32>
    %cst_65 = arith.constant dense<0.000000e+00> : vector<8x768xf32>
    %86 = tpu.matmul %85, %83, %cst_65 {dimension_numbers = #tpu.dot_dimension_numbers<[1], [0], [0], [1], [0, 0, 1, 1], [], []>} : vector<8x8xf32>, vector<8x768xf32>, vector<8x768xf32> -> vector<8x768xf32>
    %87 = arith.addf %82, %86 : vector<8x768xf32>
    %c0_66 = arith.constant 0 : index
    %c111_67 = arith.constant 111 : index
    %88 = vector.load %arg11[%c0_66, %c111_67] : memref<8x1024xf32, #tpu.memory_space<vmem>>, vector<8x768xf32>
    %c2_68 = arith.constant 2 : index
    %c0_69 = arith.constant 0 : index
    %c0_70 = arith.constant 0 : index
    %89 = vector.load %arg5[%c2_68, %c0_69, %c0_70] : memref<9x8x8xf32, #tpu.memory_space<vmem>>, vector<1x8x8xf32>
    %90 = vector.shape_cast %89 : vector<1x8x8xf32> to vector<8x8xf32>
    %cst_71 = arith.constant dense<0.000000e+00> : vector<8x768xf32>
    %91 = tpu.matmul %90, %88, %cst_71 {dimension_numbers = #tpu.dot_dimension_numbers<[1], [0], [0], [1], [0, 0, 1, 1], [], []>} : vector<8x8xf32>, vector<8x768xf32>, vector<8x768xf32> -> vector<8x768xf32>
    %92 = arith.addf %87, %91 : vector<8x768xf32>
    %c0_72 = arith.constant 0 : index
    %c127_73 = arith.constant 127 : index
    %93 = vector.load %arg11[%c0_72, %c127_73] : memref<8x1024xf32, #tpu.memory_space<vmem>>, vector<8x768xf32>
    %c3_74 = arith.constant 3 : index
    %c0_75 = arith.constant 0 : index
    %c0_76 = arith.constant 0 : index
    %94 = vector.load %arg5[%c3_74, %c0_75, %c0_76] : memref<9x8x8xf32, #tpu.memory_space<vmem>>, vector<1x8x8xf32>
    %95 = vector.shape_cast %94 : vector<1x8x8xf32> to vector<8x8xf32>
    %cst_77 = arith.constant dense<0.000000e+00> : vector<8x768xf32>
    %96 = tpu.matmul %95, %93, %cst_77 {dimension_numbers = #tpu.dot_dimension_numbers<[1], [0], [0], [1], [0, 0, 1, 1], [], []>} : vector<8x8xf32>, vector<8x768xf32>, vector<8x768xf32> -> vector<8x768xf32>
    %97 = arith.addf %92, %96 : vector<8x768xf32>
    %c0_78 = arith.constant 0 : index
    %c128_79 = arith.constant 128 : index
    %98 = vector.load %arg11[%c0_78, %c128_79] : memref<8x1024xf32, #tpu.memory_space<vmem>>, vector<8x768xf32>
    %c4_80 = arith.constant 4 : index
    %c0_81 = arith.constant 0 : index
    %c0_82 = arith.constant 0 : index
    %99 = vector.load %arg5[%c4_80, %c0_81, %c0_82] : memref<9x8x8xf32, #tpu.memory_space<vmem>>, vector<1x8x8xf32>
    %100 = vector.shape_cast %99 : vector<1x8x8xf32> to vector<8x8xf32>
    %cst_83 = arith.constant dense<0.000000e+00> : vector<8x768xf32>
    %101 = tpu.matmul %100, %98, %cst_83 {dimension_numbers = #tpu.dot_dimension_numbers<[1], [0], [0], [1], [0, 0, 1, 1], [], []>} : vector<8x8xf32>, vector<8x768xf32>, vector<8x768xf32> -> vector<8x768xf32>
    %102 = arith.addf %97, %101 : vector<8x768xf32>
    %c0_84 = arith.constant 0 : index
    %c129_85 = arith.constant 129 : index
    %103 = vector.load %arg11[%c0_84, %c129_85] : memref<8x1024xf32, #tpu.memory_space<vmem>>, vector<8x768xf32>
    %c5_86 = arith.constant 5 : index
    %c0_87 = arith.constant 0 : index
    %c0_88 = arith.constant 0 : index
    %104 = vector.load %arg5[%c5_86, %c0_87, %c0_88] : memref<9x8x8xf32, #tpu.memory_space<vmem>>, vector<1x8x8xf32>
    %105 = vector.shape_cast %104 : vector<1x8x8xf32> to vector<8x8xf32>
    %cst_89 = arith.constant dense<0.000000e+00> : vector<8x768xf32>
    %106 = tpu.matmul %105, %103, %cst_89 {dimension_numbers = #tpu.dot_dimension_numbers<[1], [0], [0], [1], [0, 0, 1, 1], [], []>} : vector<8x8xf32>, vector<8x768xf32>, vector<8x768xf32> -> vector<8x768xf32>
    %107 = arith.addf %102, %106 : vector<8x768xf32>
    %c0_90 = arith.constant 0 : index
    %c145_91 = arith.constant 145 : index
    %108 = vector.load %arg11[%c0_90, %c145_91] : memref<8x1024xf32, #tpu.memory_space<vmem>>, vector<8x768xf32>
    %c6_92 = arith.constant 6 : index
    %c0_93 = arith.constant 0 : index
    %c0_94 = arith.constant 0 : index
    %109 = vector.load %arg5[%c6_92, %c0_93, %c0_94] : memref<9x8x8xf32, #tpu.memory_space<vmem>>, vector<1x8x8xf32>
    %110 = vector.shape_cast %109 : vector<1x8x8xf32> to vector<8x8xf32>
    %cst_95 = arith.constant dense<0.000000e+00> : vector<8x768xf32>
    %111 = tpu.matmul %110, %108, %cst_95 {dimension_numbers = #tpu.dot_dimension_numbers<[1], [0], [0], [1], [0, 0, 1, 1], [], []>} : vector<8x8xf32>, vector<8x768xf32>, vector<8x768xf32> -> vector<8x768xf32>
    %112 = arith.addf %107, %111 : vector<8x768xf32>
    %c0_96 = arith.constant 0 : index
    %c146_97 = arith.constant 146 : index
    %113 = vector.load %arg11[%c0_96, %c146_97] : memref<8x1024xf32, #tpu.memory_space<vmem>>, vector<8x768xf32>
    %c7_98 = arith.constant 7 : index
    %c0_99 = arith.constant 0 : index
    %c0_100 = arith.constant 0 : index
    %114 = vector.load %arg5[%c7_98, %c0_99, %c0_100] : memref<9x8x8xf32, #tpu.memory_space<vmem>>, vector<1x8x8xf32>
    %115 = vector.shape_cast %114 : vector<1x8x8xf32> to vector<8x8xf32>
    %cst_101 = arith.constant dense<0.000000e+00> : vector<8x768xf32>
    %116 = tpu.matmul %115, %113, %cst_101 {dimension_numbers = #tpu.dot_dimension_numbers<[1], [0], [0], [1], [0, 0, 1, 1], [], []>} : vector<8x8xf32>, vector<8x768xf32>, vector<8x768xf32> -> vector<8x768xf32>
    %117 = arith.addf %112, %116 : vector<8x768xf32>
    %c0_102 = arith.constant 0 : index
    %c147_103 = arith.constant 147 : index
    %118 = vector.load %arg11[%c0_102, %c147_103] : memref<8x1024xf32, #tpu.memory_space<vmem>>, vector<8x768xf32>
    %c8_104 = arith.constant 8 : index
    %c0_105 = arith.constant 0 : index
    %c0_106 = arith.constant 0 : index
    %119 = vector.load %arg5[%c8_104, %c0_105, %c0_106] : memref<9x8x8xf32, #tpu.memory_space<vmem>>, vector<1x8x8xf32>
    %120 = vector.shape_cast %119 : vector<1x8x8xf32> to vector<8x8xf32>
    %cst_107 = arith.constant dense<0.000000e+00> : vector<8x768xf32>
    %121 = tpu.matmul %120, %118, %cst_107 {dimension_numbers = #tpu.dot_dimension_numbers<[1], [0], [0], [1], [0, 0, 1, 1], [], []>} : vector<8x8xf32>, vector<8x768xf32>, vector<8x768xf32> -> vector<8x768xf32>
    %122 = arith.addf %117, %121 : vector<8x768xf32>
    %123 = vector.broadcast %0 : vector<1x768xf32> to vector<8x768xf32>
    %124 = arith.mulf %122, %123 : vector<8x768xf32>
    %cst_108 = arith.constant dense<0.000000e+00> : vector<8xf32>
    %125 = vector.multi_reduction <add>, %124, %cst_108 [1] : vector<8x768xf32> to vector<8xf32>
    %126 = vector.shape_cast %125 : vector<8xf32> to vector<8x1xf32>
    %cst_109 = arith.constant 0.001953125 : f32
    %127 = vector.broadcast %cst_109 : f32 to vector<8x1xf32>
    %128 = arith.mulf %126, %127 : vector<8x1xf32>
    %129 = arith.mulf %124, %122 : vector<8x768xf32>
    %cst_110 = arith.constant dense<0.000000e+00> : vector<8xf32>
    %130 = vector.multi_reduction <add>, %129, %cst_110 [1] : vector<8x768xf32> to vector<8xf32>
    %131 = vector.shape_cast %130 : vector<8xf32> to vector<8x1xf32>
    %cst_111 = arith.constant 0.001953125 : f32
    %132 = vector.broadcast %cst_111 : f32 to vector<8x1xf32>
    %133 = arith.mulf %131, %132 : vector<8x1xf32>
    %134 = arith.mulf %128, %128 : vector<8x1xf32>
    %135 = arith.subf %133, %134 : vector<8x1xf32>
    %c0_112 = arith.constant 0 : index
    %c0_113 = arith.constant 0 : index
    %136 = vector.load %arg6[%c0_112, %c0_113] : memref<8x1xf32, #tpu.memory_space<vmem>>, vector<8x1xf32>
    %cst_114 = arith.constant 9.99999974E-6 : f32
    %137 = vector.broadcast %cst_114 : f32 to vector<8x1xf32>
    %138 = arith.addf %135, %137 : vector<8x1xf32>
    %139 = math.rsqrt %138 : vector<8x1xf32>
    %140 = arith.mulf %136, %139 : vector<8x1xf32>
    %c0_115 = arith.constant 0 : index
    %c0_116 = arith.constant 0 : index
    %141 = vector.load %arg7[%c0_115, %c0_116] : memref<8x1xf32, #tpu.memory_space<vmem>>, vector<8x1xf32>
    %142 = arith.mulf %128, %140 : vector<8x1xf32>
    %143 = arith.subf %141, %142 : vector<8x1xf32>
    %144 = vector.broadcast %140 : vector<8x1xf32> to vector<8x768xf32>
    %145 = arith.mulf %122, %144 : vector<8x768xf32>
    %146 = vector.broadcast %143 : vector<8x1xf32> to vector<8x768xf32>
    %147 = arith.addf %145, %146 : vector<8x768xf32>
    %c0_117 = arith.constant 0 : index
    %c0_118 = arith.constant 0 : index
    %148 = vector.load %arg8[%c0_117, %c0_118] : memref<8x8xf32, #tpu.memory_space<vmem>>, vector<8x8xf32>
    %c0_119 = arith.constant 0 : index
    %c128_120 = arith.constant 128 : index
    %149 = vector.load %arg0[%c0_119, %c128_120] : memref<8x1024xf32, #tpu.memory_space<vmem>>, vector<8x768xf32>
    %cst_121 = arith.constant dense<0.000000e+00> : vector<8x768xf32>
    %150 = tpu.matmul %148, %149, %cst_121 {dimension_numbers = #tpu.dot_dimension_numbers<[1], [0], [0], [1], [0, 0, 1, 1], [], []>} : vector<8x8xf32>, vector<8x768xf32>, vector<8x768xf32> -> vector<8x768xf32>
    %151 = arith.addf %147, %150 : vector<8x768xf32>
    %c0_122 = arith.constant 0 : index
    %c0_123 = arith.constant 0 : index
    %152 = vector.load %arg9[%c0_122, %c0_123] : memref<8x1xf32, #tpu.memory_space<vmem>>, vector<8x1xf32>
    %153 = vector.broadcast %152 : vector<8x1xf32> to vector<8x768xf32>
    %154 = arith.addf %151, %153 : vector<8x768xf32>
    %cst_124 = arith.constant 0.000000e+00 : f32
    %155 = vector.broadcast %cst_124 : f32 to vector<8x768xf32>
    %156 = arith.maximumf %154, %155 : vector<8x768xf32>
    %c0_125 = arith.constant 0 : index
    %c0_126 = arith.constant 0 : index
    %157 = vector.load %arg10[%c0_125, %c0_126] : memref<8x768xf32, #tpu.memory_space<vmem>>, vector<8x768xf32>
    tpu.vector_store %arg10[%c0_125, %c0_126], %156 {strides = array<i32>} : memref<8x768xf32, #tpu.memory_space<vmem>>, vector<8x768xf32>,
    return
  }
}

</mosaic_0001>

<bundles_post_ra>
// kernel: tpu_custom_call.1
= control target key start
LH: loop header
LB: loop body
LE: loop exit
PB: predicated region body
PF: predicated region fallthrough
CT: control target
= control target key end

     0   :  { %s5072_s17 = smov 18   ;;  %v5073_v4 = vmov 0.0   ;;  %s5806_s0 = inlined_call_operand.vmem [shape: f32[8,1024], index: 0, kind: input, shape index: {}]   ;;  %s5807_s1 = inlined_call_operand.vmem [shape: f32[1,768], index: 1, kind: input, shape index: {}]   ;;  %s5808_s2 = inlined_call_operand.vmem [shape: f32[9,8,8], index: 2, kind: input, shape index: {}]   ;;  %s5809_s3 = inlined_call_operand.vmem [shape: f32[8,1], index: 3, kind: input, shape index: {}]   ;;  %s5810_s4 = inlined_call_operand.vmem [shape: f32[8,1], index: 4, kind: input, shape index: {}]   ;;  %s5811_s5 = inlined_call_operand.vmem [shape: f32[9,8,8], index: 5, kind: input, shape index: {}]   ;;  %s5812_s6 = inlined_call_operand.vmem [shape: f32[8,1], index: 6, kind: input, shape index: {}]   ;;  %s5813_s7 = inlined_call_operand.vmem [shape: f32[8,1], index: 7, kind: input, shape index: {}]   ;;  %s5814_s8 = inlined_call_operand.vmem [shape: f32[8,8], index: 8, kind: input, shape index: {}]   ;;  %s5815_s9 = inlined_call_operand.vmem [shape: f32[8,1], index: 9, kind: input, shape index: {}]   ;;  %s5816_s10 = inlined_call_operand.hbm [shape: f32[8,768], index: 10, kind: output, shape index: {}]  }
   0x1   :  { %v5141_v0 = vld [vmem:[%s5806_s0 + $0x8] sm:$0xff]  ;;  %v37_v1 = vld [vmem:[%s5806_s0] sm:$0xff]  ;;  %v5152_v2 = vld [vmem:[%s5806_s0 + $0x10] sm:$0xff]  ;;  %149 = vmatprep.mubr.f32.mxu0 %v5073_v4  ;;  %220 = vmatprep.mubr.f32.mxu1 %v5073_v4 }
   0x2   :  { %56 = vrot.lane.b32.xlu0 %v5141_v0, %s5072_s17  ;;  %54 = vrot.lane.b32.xlu1 %v37_v1, %s5072_s17  ;;  %v5157_v3 = vld [vmem:[%s5806_s0 + $0x18] sm:$0xff] }
   0x3   :  { %15 = vsyncpa [#allocation4], 0  ;;  %v5168_v5 = vld [vmem:[%s5806_s0 + $0x20] sm:$0xff]  ;;  %v5173_v6 = vld [vmem:[%s5806_s0 + $0x28] sm:$0xff]  ;;  %s5074_s28 = smov 19   ;;  %s5075_s29 = smov 17  }
   0x4   :  { %v5182_v7 = vld [vmem:[%s5806_s0 + $0x30] sm:$0xff]  ;;  %s5076_s30 = smov 1   ;;  %s5077_s11 = smov 127   ;;  %v1273_v8 = vld [vmem:[%s5806_s0 + $0x38] sm:$0xff]  ;;  %vm68_vm0 = vcmask 146432   ;;  %v4960_v14 = vld [vmem:[%s5808_s2 + $0x8] sm:$0xff] }
   0x5   :  { %s5078_s14 = smov 111   ;;  %s5079_s15 = smov 110   ;;  %vm81_vm1 = vcmask 64512   ;;  %vm312_vm2 = vcmask 154624   ;;  %v44_v29 = vld [vmem:[%s5808_s2] sm:$0xff]  ;;  %vm557_vm3 = vcmask 138240  }
   0x6   :  { %58 = vrot.lane.b32.xlu0 %v5152_v2, %s5072_s17  ;;  %60 = vrot.lane.b32.xlu1 %v5157_v3, %s5072_s17  ;;  %s5080_s16 = smov 109   ;;  %v4967_v42 = vld [vmem:[%s5808_s2 + $0x10] sm:$0xff]  ;;  %vm808_vm4 = vcmask 7168   ;;  %v4971_v57 = vld [vmem:[%s5808_s2 + $0x18] sm:$0xff]  ;;  %vm1297_vm5 = vcmask 1039360   ;;  %vm1548_vm6 = vcmask 908288  }
   0x7   :  { %vm1799_vm7 = vcmask 900096   ;;  %vm2050_vm8 = vcmask 891904  }
   0xa   :  { %62 = vrot.lane.b32.xlu0 %v5168_v5, %s5072_s17  ;;  %64 = vrot.lane.b32.xlu1 %v5173_v6, %s5072_s17 }
   0xe   :  { %66 = vrot.lane.b32.xlu0 %v5182_v7, %s5072_s17  ;;  %300 = vrot.lane.b32.xlu1 %v5141_v0, %s5074_s28 }
  0x12   :  { %302 = vrot.lane.b32.xlu0 %v5152_v2, %s5074_s28  ;;  %304 = vrot.lane.b32.xlu1 %v5157_v3, %s5074_s28 }
  0x16   :  { %306 = vrot.lane.b32.xlu0 %v5168_v5, %s5074_s28  ;;  %298 = vrot.lane.b32.xlu1 %v37_v1, %s5074_s28 }
  0x1a   :  { %308 = vrot.lane.b32.xlu0 %v5173_v6, %s5074_s28  ;;  %310 = vrot.lane.b32.xlu1 %v5182_v7, %s5074_s28 }
  0x1e   :  { %545 = vrot.lane.b32.xlu0 %v5141_v0, %s5075_s29  ;;  %547 = vrot.lane.b32.xlu1 %v5152_v2, %s5075_s29 }
  0x22   :  { %543 = vrot.lane.b32.xlu0 %v37_v1, %s5075_s29  ;;  %549 = vrot.lane.b32.xlu1 %v5157_v3, %s5075_s29 }
  0x26   :  { %551 = vrot.lane.b32.xlu0 %v5168_v5, %s5075_s29  ;;  %553 = vrot.lane.b32.xlu1 %v5173_v6, %s5075_s29 }
  0x2a   :  { %555 = vrot.lane.b32.xlu0 %v5182_v7, %s5075_s29  ;;  %796 = vrot.lane.b32.xlu1 %v5141_v0, %s5076_s30 }
  0x2e   :  { %798 = vrot.lane.b32.xlu0 %v5152_v2, %s5076_s30  ;;  %800 = vrot.lane.b32.xlu1 %v5157_v3, %s5076_s30 }
  0x32   :  { %802 = vrot.lane.b32.xlu0 %v5168_v5, %s5076_s30  ;;  %794 = vrot.lane.b32.xlu1 %v37_v1, %s5076_s30 }
  0x36   :  { %804 = vrot.lane.b32.xlu0 %v5173_v6, %s5076_s30  ;;  %806 = vrot.lane.b32.xlu1 %v5182_v7, %s5076_s30 }
  0x3a   :  { %1285 = vrot.lane.b32.xlu0 %v5152_v2, %s5077_s11  ;;  %1287 = vrot.lane.b32.xlu1 %v5157_v3, %s5077_s11 }
  0x3e   :  { %1289 = vrot.lane.b32.xlu0 %v5168_v5, %s5077_s11  ;;  %1291 = vrot.lane.b32.xlu1 %v5173_v6, %s5077_s11 }
  0x42   :  { %1283 = vrot.lane.b32.xlu0 %v5141_v0, %s5077_s11  ;;  %1293 = vrot.lane.b32.xlu1 %v5182_v7, %s5077_s11 }
  0x46   :  { %1295 = vrot.lane.b32.xlu0 %v1273_v8, %s5077_s11  ;;  %1536 = vrot.lane.b32.xlu1 %v5152_v2, %s5078_s14 }
  0x4a   :  { %1538 = vrot.lane.b32.xlu0 %v5157_v3, %s5078_s14  ;;  %1534 = vrot.lane.b32.xlu1 %v5141_v0, %s5078_s14 }
  0x4e   :  { %1540 = vrot.lane.b32.xlu0 %v5168_v5, %s5078_s14  ;;  %1542 = vrot.lane.b32.xlu1 %v5173_v6, %s5078_s14 }
  0x52   :  { %1544 = vrot.lane.b32.xlu0 %v5182_v7, %s5078_s14  ;;  %1546 = vrot.lane.b32.xlu1 %v1273_v8, %s5078_s14 }
  0x56   :  { %1787 = vrot.lane.b32.xlu0 %v5152_v2, %s5079_s15  ;;  %1789 = vrot.lane.b32.xlu1 %v5157_v3, %s5079_s15 }
  0x5a   :  { %1791 = vrot.lane.b32.xlu0 %v5168_v5, %s5079_s15  ;;  %1793 = vrot.lane.b32.xlu1 %v5173_v6, %s5079_s15 }
  0x5e   :  { %1785 = vrot.lane.b32.xlu0 %v5141_v0, %s5079_s15  ;;  %1795 = vrot.lane.b32.xlu1 %v5182_v7, %s5079_s15 }
  0x62   :  { %1797 = vrot.lane.b32.xlu0 %v1273_v8, %s5079_s15  ;;  %2038 = vrot.lane.b32.xlu1 %v5152_v2, %s5080_s16 }
  0x66   :  { %2040 = vrot.lane.b32.xlu0 %v5157_v3, %s5080_s16  ;;  %2036 = vrot.lane.b32.xlu1 %v5141_v0, %s5080_s16 }
  0x6a   :  { %2042 = vrot.lane.b32.xlu0 %v5168_v5, %s5080_s16  ;;  %2044 = vrot.lane.b32.xlu1 %v5173_v6, %s5080_s16 }
  0x6e   :  { %2046 = vrot.lane.b32.xlu0 %v5182_v7, %s5080_s16  ;;  %2048 = vrot.lane.b32.xlu1 %v1273_v8, %s5080_s16  ;;  %v4975_v8 = vld [vmem:[%s5808_s2 + $0x20] sm:$0xff] }
  0x74   :  { %v57_v9 = vpop.permute.xlu0 %56  ;;  %v55_v10 = vpop.permute.xlu1 %54 }
  0x75   :  { %v69_v15 = vsel %vm68_vm0, %v55_v10, %v57_v9 }
  0x78   :  { %v59_v11 = vpop.permute.xlu0 %58  ;;  %v61_v12 = vpop.permute.xlu1 %60 }
  0x79   :  { %v70_v13 = vsel %vm68_vm0, %v57_v9, %v59_v11  ;;  %v71_v19 = vsel %vm68_vm0, %v59_v11, %v61_v12 }
  0x7a   :  { %115 = vmatprep.subr.mxu0 %v70_v13 }
  0x7b   :  { %116 = vmatpush1.msra.mxu0 %v69_v15 }
  0x7c   :  { %v63_v16 = vpop.permute.xlu0 %62  ;;  %v65_v17 = vpop.permute.xlu1 %64  ;;  %4961 = vmatmul.mubr.msk.f32.vlgmr.msra.gmra.mxu0 %vm81_vm1, %v4960_v14 }
  0x7d   :  { %v72_v18 = vsel %vm68_vm0, %v61_v12, %v63_v16  ;;  %291 = vmatprep.mubr.f32.mxu0 %v5073_v4  ;;  %v73_v23 = vsel %vm68_vm0, %v63_v16, %v65_v17 }
  0x7e   :  { %186 = vmatprep.subr.mxu1 %v72_v18 }
  0x7f   :  { %187 = vmatpush1.msra.mxu1 %v71_v19 }
  0x80   :  { %v67_v20 = vpop.permute.xlu0 %66  ;;  %v301_v21 = vpop.permute.xlu1 %300  ;;  %4962 = vmatmul.mubr.msk.f32.vlgmr.msra.gmra.mxu1 %vm81_vm1, %v4960_v14 }
  0x81   :  { %v74_v22 = vsel %vm68_vm0, %v65_v17, %v67_v20  ;;  %392 = vmatprep.mubr.f32.mxu1 %v5073_v4 }
  0x82   :  { %257 = vmatprep.subr.mxu0 %v74_v22  ;;  %v4983_v22 = vld [vmem:[%s5808_s2 + $0x30] sm:$0xff] }
  0x83   :  { %258 = vmatpush1.msra.mxu0 %v73_v23 }
  0x84   :  { %v303_v24 = vpop.permute.xlu0 %302  ;;  %v305_v25 = vpop.permute.xlu1 %304  ;;  %4963 = vmatmul.mubr.msk.f32.vlgmr.msra.gmra.mxu0 %vm81_vm1, %v4960_v14 }
  0x85   :  { %v314_v26 = vsel %vm312_vm2, %v301_v21, %v303_v24  ;;  %463 = vmatprep.mubr.f32.mxu0 %v5073_v4  ;;  %v315_v32 = vsel %vm312_vm2, %v303_v24, %v305_v25 }
  0x86   :  { %358 = vmatprep.subr.mxu1 %v314_v26 }
  0x88   :  { %v307_v27 = vpop.permute.xlu0 %306  ;;  %v299_v28 = vpop.permute.xlu1 %298 }
  0x89   :  { %v313_v30 = vsel %vm312_vm2, %v299_v28, %v301_v21  ;;  %v316_v31 = vsel %vm312_vm2, %v305_v25, %v307_v27 }
  0x8a   :  { %359 = vmatpush1.msra.mxu1 %v313_v30  ;;  %429 = vmatprep.subr.mxu0 %v316_v31 }
  0x8b   :  { %430 = vmatpush1.msra.mxu0 %v315_v32  ;;  %4964 = vmatmul.mubr.msk.f32.vlgmr.msra.gmra.mxu1 %vm81_vm1, %v44_v29 }
  0x8c   :  { %v309_v33 = vpop.permute.xlu0 %308  ;;  %v311_v34 = vpop.permute.xlu1 %310  ;;  %4965 = vmatmul.mubr.msk.f32.vlgmr.msra.gmra.mxu0 %vm81_vm1, %v44_v29  ;;  %534 = vmatprep.mubr.f32.mxu1 %v5073_v4 }
  0x8d   :  { %v318_v35 = vsel %vm312_vm2, %v309_v33, %v311_v34  ;;  %v317_v36 = vsel %vm312_vm2, %v307_v27, %v309_v33  ;;  %637 = vmatprep.mubr.f32.mxu0 %v5073_v4 }
  0x8e   :  { %500 = vmatprep.subr.mxu1 %v318_v35 }
  0x8f   :  { %501 = vmatpush1.msra.mxu1 %v317_v36 }
  0x90   :  { %v546_v37 = vpop.permute.xlu0 %545  ;;  %v548_v38 = vpop.permute.xlu1 %547  ;;  %4966 = vmatmul.mubr.msk.f32.vlgmr.msra.gmra.mxu1 %vm81_vm1, %v44_v29 }
  0x91   :  { %v559_v39 = vsel %vm557_vm3, %v546_v37, %v548_v38  ;;  %708 = vmatprep.mubr.f32.mxu1 %v5073_v4 }
  0x92   :  { %603 = vmatprep.subr.mxu0 %v559_v39 }
  0x94   :  { %v544_v40 = vpop.permute.xlu0 %543  ;;  %v550_v41 = vpop.permute.xlu1 %549 }
  0x95   :  { %v558_v43 = vsel %vm557_vm3, %v544_v40, %v546_v37  ;;  %v560_v47 = vsel %vm557_vm3, %v548_v38, %v550_v41  ;;  %v4987_v38 = vld [vmem:[%s5808_s2 + $0x38] sm:$0xff] }
  0x96   :  { %604 = vmatpush1.msra.mxu0 %v558_v43 }
  0x97   :  { %4968 = vmatmul.mubr.msk.f32.vlgmr.msra.gmra.mxu0 %vm81_vm1, %v4967_v42 }
  0x98   :  { %v552_v44 = vpop.permute.xlu0 %551  ;;  %v554_v45 = vpop.permute.xlu1 %553  ;;  %779 = vmatprep.mubr.f32.mxu0 %v5073_v4 }
  0x99   :  { %v561_v46 = vsel %vm557_vm3, %v550_v41, %v552_v44  ;;  %v562_v51 = vsel %vm557_vm3, %v552_v44, %v554_v45 }
  0x9a   :  { %674 = vmatprep.subr.mxu1 %v561_v46 }
  0x9b   :  { %675 = vmatpush1.msra.mxu1 %v560_v47 }
  0x9c   :  { %v556_v48 = vpop.permute.xlu0 %555  ;;  %v797_v49 = vpop.permute.xlu1 %796  ;;  %4969 = vmatmul.mubr.msk.f32.vlgmr.msra.gmra.mxu1 %vm81_vm1, %v4967_v42 }
  0x9d   :  { %v563_v50 = vsel %vm557_vm3, %v554_v45, %v556_v48  ;;  %888 = vmatprep.mubr.f32.mxu1 %v5073_v4 }
  0x9e   :  { %745 = vmatprep.subr.mxu0 %v563_v50  ;;  %v4991_v50 = vld [vmem:[%s5808_s2 + $0x40] sm:$0xff] }
  0x9f   :  { %746 = vmatpush1.msra.mxu0 %v562_v51 }
  0xa0   :  { %v799_v52 = vpop.permute.xlu0 %798  ;;  %v801_v53 = vpop.permute.xlu1 %800  ;;  %4970 = vmatmul.mubr.msk.f32.vlgmr.msra.gmra.mxu0 %vm81_vm1, %v4967_v42 }
  0xa1   :  { %v810_v54 = vsel %vm808_vm4, %v797_v49, %v799_v52  ;;  %959 = vmatprep.mubr.f32.mxu0 %v5073_v4  ;;  %v811_v60 = vsel %vm808_vm4, %v799_v52, %v801_v53 }
  0xa2   :  { %854 = vmatprep.subr.mxu1 %v810_v54 }
  0xa4   :  { %v803_v55 = vpop.permute.xlu0 %802  ;;  %v795_v56 = vpop.permute.xlu1 %794 }
  0xa5   :  { %v809_v58 = vsel %vm808_vm4, %v795_v56, %v797_v49  ;;  %v812_v59 = vsel %vm808_vm4, %v801_v53, %v803_v55 }
  0xa6   :  { %855 = vmatpush1.msra.mxu1 %v809_v58  ;;  %925 = vmatprep.subr.mxu0 %v812_v59 }
  0xa7   :  { %926 = vmatpush1.msra.mxu0 %v811_v60  ;;  %4972 = vmatmul.mubr.msk.f32.vlgmr.msra.gmra.mxu1 %vm81_vm1, %v4971_v57 }
  0xa8   :  { %v805_v61 = vpop.permute.xlu0 %804  ;;  %v807_v62 = vpop.permute.xlu1 %806  ;;  %4973 = vmatmul.mubr.msk.f32.vlgmr.msra.gmra.mxu0 %vm81_vm1, %v4971_v57  ;;  %1030 = vmatprep.mubr.f32.mxu1 %v5073_v4 }
  0xa9   :  { %v813_v63 = vsel %vm808_vm4, %v803_v55, %v805_v61  ;;  %v814_v1 = vsel %vm808_vm4, %v805_v61, %v807_v62  ;;  %1078 = vmatprep.subr.mxu0 %v5152_v2  ;;  %1112 = vmatprep.mubr.f32.mxu0 %v5073_v4 }
  0xaa   :  { %996 = vmatprep.subr.mxu1 %v814_v1  ;;  %1079 = vmatpush1.msra.mxu0 %v5141_v0 }
  0xab   :  { %997 = vmatpush1.msra.mxu1 %v813_v63  ;;  %1220 = vmatprep.subr.mxu0 %v5182_v7 }
  0xac   :  { %v1286_v9 = vpop.permute.xlu0 %1285  ;;  %1149 = vmatprep.subr.mxu1 %v5168_v5  ;;  %v1288_v10 = vpop.permute.xlu1 %1287  ;;  %4974 = vmatmul.mubr.msk.f32.vlgmr.msra.gmra.mxu1 %vm81_vm1, %v4971_v57 }
  0xad   :  { %1150 = vmatpush1.msra.mxu1 %v5157_v3  ;;  %4976 = vmatmul.mubr.msk.f32.vlgmr.msra.gmra.mxu0 %vm81_vm1, %v4975_v8  ;;  %v1299_v0 = vsel %vm1297_vm5, %v1286_v9, %v1288_v10 }
  0xae   :  { %1343 = vmatprep.subr.mxu1 %v1299_v0  ;;  %1221 = vmatpush1.msra.mxu0 %v5173_v6  ;;  %v4979_v6 = vld [vmem:[%s5808_s2 + $0x28] sm:$0xff] }
  0xaf   :  { %1254 = vmatprep.mubr.f32.mxu0 %v5073_v4  ;;  %1183 = vmatprep.mubr.f32.mxu1 %v5073_v4 }
  0xb0   :  { %v1290_v2 = vpop.permute.xlu0 %1289  ;;  %v1292_v7 = vpop.permute.xlu1 %1291  ;;  %4977 = vmatmul.mubr.msk.f32.vlgmr.msra.gmra.mxu1 %vm81_vm1, %v4975_v8 }
  0xb1   :  { %v1300_v5 = vsel %vm1297_vm5, %v1288_v10, %v1290_v2  ;;  %4978 = vmatmul.mubr.msk.f32.vlgmr.msra.gmra.mxu0 %vm81_vm1, %v4975_v8  ;;  %v1301_v3 = vsel %vm1297_vm5, %v1290_v2, %v1292_v7  ;;  %1377 = vmatprep.mubr.f32.mxu1 %v5073_v4 }
  0xb2   :  { %1414 = vmatprep.subr.mxu0 %v1301_v3  ;;  %1448 = vmatprep.mubr.f32.mxu0 %v5073_v4 }
  0xb3   :  { %1415 = vmatpush1.msra.mxu0 %v1300_v5 }
  0xb4   :  { %v1284_v11 = vpop.permute.xlu0 %1283  ;;  %v1294_v12 = vpop.permute.xlu1 %1293 }
  0xb5   :  { %v1298_v13 = vsel %vm1297_vm5, %v1284_v11, %v1286_v9  ;;  %4981 = vmatmul.mubr.msk.f32.vlgmr.msra.gmra.mxu0 %vm81_vm1, %v4979_v6  ;;  %v1302_v17 = vsel %vm1297_vm5, %v1292_v7, %v1294_v12 }
  0xb6   :  { %1344 = vmatpush1.msra.mxu1 %v1298_v13  ;;  %1628 = vmatprep.mubr.f32.mxu0 %v5073_v4 }
  0xb7   :  { %4980 = vmatmul.mubr.msk.f32.vlgmr.msra.gmra.mxu1 %vm81_vm1, %v4979_v6 }
  0xb8   :  { %v1296_v14 = vpop.permute.xlu0 %1295  ;;  %v1537_v15 = vpop.permute.xlu1 %1536  ;;  %1519 = vmatprep.mubr.f32.mxu1 %v5073_v4 }
  0xb9   :  { %v1303_v16 = vsel %vm1297_vm5, %v1294_v12, %v1296_v14 }
  0xba   :  { %1485 = vmatprep.subr.mxu1 %v1303_v16 }
  0xbb   :  { %1486 = vmatpush1.msra.mxu1 %v1302_v17 }
  0xbc   :  { %v1539_v18 = vpop.permute.xlu0 %1538  ;;  %4982 = vmatmul.mubr.msk.f32.vlgmr.msra.gmra.mxu1 %vm81_vm1, %v4979_v6  ;;  %v1535_v19 = vpop.permute.xlu1 %1534 }
  0xbd   :  { %v1549_v20 = vsel %vm1548_vm6, %v1535_v19, %v1537_v15  ;;  %v1550_v21 = vsel %vm1548_vm6, %v1537_v15, %v1539_v18  ;;  %1699 = vmatprep.mubr.f32.mxu1 %v5073_v4 }
  0xbe   :  { %1594 = vmatprep.subr.mxu0 %v1550_v21 }
  0xbf   :  { %1595 = vmatpush1.msra.mxu0 %v1549_v20 }
  0xc0   :  { %v1541_v23 = vpop.permute.xlu0 %1540  ;;  %4984 = vmatmul.mubr.msk.f32.vlgmr.msra.gmra.mxu0 %vm81_vm1, %v4983_v22  ;;  %v1543_v24 = vpop.permute.xlu1 %1542 }
  0xc1   :  { %v1551_v25 = vsel %vm1548_vm6, %v1539_v18, %v1541_v23  ;;  %v1552_v26 = vsel %vm1548_vm6, %v1541_v23, %v1543_v24  ;;  %1770 = vmatprep.mubr.f32.mxu0 %v5073_v4 }
  0xc2   :  { %1665 = vmatprep.subr.mxu1 %v1552_v26 }
  0xc3   :  { %1666 = vmatpush1.msra.mxu1 %v1551_v25 }
  0xc4   :  { %v1545_v27 = vpop.permute.xlu0 %1544  ;;  %4985 = vmatmul.mubr.msk.f32.vlgmr.msra.gmra.mxu1 %vm81_vm1, %v4983_v22  ;;  %v1547_v28 = vpop.permute.xlu1 %1546 }
  0xc5   :  { %v1553_v29 = vsel %vm1548_vm6, %v1543_v24, %v1545_v27  ;;  %v1554_v30 = vsel %vm1548_vm6, %v1545_v27, %v1547_v28  ;;  %1879 = vmatprep.mubr.f32.mxu1 %v5073_v4 }
  0xc6   :  { %1736 = vmatprep.subr.mxu0 %v1554_v30 }
  0xc7   :  { %1737 = vmatpush1.msra.mxu0 %v1553_v29 }
  0xc8   :  { %v1788_v31 = vpop.permute.xlu0 %1787  ;;  %4986 = vmatmul.mubr.msk.f32.vlgmr.msra.gmra.mxu0 %vm81_vm1, %v4983_v22  ;;  %v1790_v32 = vpop.permute.xlu1 %1789 }
  0xc9   :  { %v1801_v33 = vsel %vm1799_vm7, %v1788_v31, %v1790_v32  ;;  %1950 = vmatprep.mubr.f32.mxu0 %v5073_v4 }
  0xca   :  { %1845 = vmatprep.subr.mxu1 %v1801_v33 }
  0xcc   :  { %v1792_v34 = vpop.permute.xlu0 %1791  ;;  %v1794_v35 = vpop.permute.xlu1 %1793 }
  0xcd   :  { %v1802_v36 = vsel %vm1799_vm7, %v1790_v32, %v1792_v34  ;;  %v1803_v37 = vsel %vm1799_vm7, %v1792_v34, %v1794_v35 }
  0xce   :  { %1916 = vmatprep.subr.mxu0 %v1803_v37 }
  0xcf   :  { %1917 = vmatpush1.msra.mxu0 %v1802_v36 }
  0xd0   :  { %v1786_v39 = vpop.permute.xlu0 %1785  ;;  %4989 = vmatmul.mubr.msk.f32.vlgmr.msra.gmra.mxu0 %vm81_vm1, %v4987_v38  ;;  %v1796_v40 = vpop.permute.xlu1 %1795 }
  0xd1   :  { %v1800_v41 = vsel %vm1799_vm7, %v1786_v39, %v1788_v31  ;;  %2130 = vmatprep.mubr.f32.mxu0 %v5073_v4  ;;  %v1804_v45 = vsel %vm1799_vm7, %v1794_v35, %v1796_v40 }
  0xd2   :  { %1846 = vmatpush1.msra.mxu1 %v1800_v41 }
  0xd3   :  { %4988 = vmatmul.mubr.msk.f32.vlgmr.msra.gmra.mxu1 %vm81_vm1, %v4987_v38 }
  0xd4   :  { %v1798_v42 = vpop.permute.xlu0 %1797  ;;  %v2039_v43 = vpop.permute.xlu1 %2038  ;;  %2021 = vmatprep.mubr.f32.mxu1 %v5073_v4 }
  0xd5   :  { %v1805_v44 = vsel %vm1799_vm7, %v1796_v40, %v1798_v42  ;;  %v2286_v42 = vlaneseq }
  0xd6   :  { %1987 = vmatprep.subr.mxu1 %v1805_v44 }
  0xd7   :  { %1988 = vmatpush1.msra.mxu1 %v1804_v45 }
  0xd8   :  { %v2041_v46 = vpop.permute.xlu0 %2040  ;;  %4990 = vmatmul.mubr.msk.f32.vlgmr.msra.gmra.mxu1 %vm81_vm1, %v4987_v38  ;;  %v2037_v47 = vpop.permute.xlu1 %2036 }
  0xd9   :  { %v2051_v48 = vsel %vm2050_vm8, %v2037_v47, %v2039_v43  ;;  %v2052_v49 = vsel %vm2050_vm8, %v2039_v43, %v2041_v46  ;;  %2201 = vmatprep.mubr.f32.mxu1 %v5073_v4 }
  0xda   :  { %2096 = vmatprep.subr.mxu0 %v2052_v49 }
  0xdb   :  { %2097 = vmatpush1.msra.mxu0 %v2051_v48 }
  0xdc   :  { %v2043_v51 = vpop.permute.xlu0 %2042  ;;  %4992 = vmatmul.mubr.msk.f32.vlgmr.msra.gmra.mxu0 %vm81_vm1, %v4991_v50  ;;  %v2045_v52 = vpop.permute.xlu1 %2044 }
  0xdd   :  { %v2053_v53 = vsel %vm2050_vm8, %v2041_v46, %v2043_v51  ;;  %v2054_v54 = vsel %vm2050_vm8, %v2043_v51, %v2045_v52  ;;  %2272 = vmatprep.mubr.f32.mxu0 %v5073_v4 }
  0xde   :  { %2167 = vmatprep.subr.mxu1 %v2054_v54 }
  0xdf   :  { %2168 = vmatpush1.msra.mxu1 %v2053_v53 }
  0xe0   :  { %v2047_v55 = vpop.permute.xlu0 %2046  ;;  %4993 = vmatmul.mubr.msk.f32.vlgmr.msra.gmra.mxu1 %vm81_vm1, %v4991_v50  ;;  %v2049_v56 = vpop.permute.xlu1 %2048 }
  0xe1   :  { %v2055_v57 = vsel %vm2050_vm8, %v2045_v52, %v2047_v55  ;;  %v2056_v58 = vsel %vm2050_vm8, %v2047_v55, %v2049_v56  ;;  %2505 = vmatprep.mubr.f32.mxu1 %v5073_v4  ;;  %v5417_v52 = vshrl.u32 %v2286_v42, 7 }
  0xe2   :  { %2238 = vmatprep.subr.mxu0 %v2056_v58 }
  0xe3   :  { %2239 = vmatpush1.msra.mxu0 %v2055_v57 }
  0xe4   :  { %4994 = vmatmul.mubr.msk.f32.vlgmr.msra.gmra.mxu0 %vm81_vm1, %v4991_v50 }
  0xe5   :  { %2576 = vmatprep.mubr.f32.mxu0 %v5073_v4 }
 0x13c   :  { %v151_v59 = vpop.f32.mrf.mxu0 }
 0x13e   :  { %v153_v61 = vpop.f32.mrf.mxu0 }
 0x140   :  { %v222_v60 = vpop.f32.mrf.mxu1 }
 0x142   :  { %v224_v62 = vpop.f32.mrf.mxu1 }
 0x144   :  { %v293_v63 = vpop.f32.mrf.mxu0 }
 0x146   :  { %v295_v8 = vpop.f32.mrf.mxu0 }
 0x14b   :  { %v394_v1 = vpop.f32.mrf.mxu1 }
 0x14c   :  { %v465_v10 = vpop.f32.mrf.mxu0  ;;  %v395_v31 = vadd.f32 %v394_v1, %v151_v59  ;;  %v2288_v1 = vsub.s32 0, %v5417_v52 }
 0x14d   :  { %v396_v9 = vpop.f32.mrf.mxu1  ;;  %v466_v33 = vadd.f32 %v465_v10, %v222_v60 }
 0x14e   :  { %v467_v2 = vpop.f32.mrf.mxu0  ;;  %v397_v34 = vadd.f32 %v396_v9, %v153_v61 }
 0x14f   :  { %v468_v36 = vadd.f32 %v467_v2, %v224_v62 }
 0x150   :  { %v536_v0 = vpop.f32.mrf.mxu1 }
 0x151   :  { %v537_v47 = vadd.f32 %v536_v0, %v293_v63  ;;  %v36_v63 = vld [vmem:[%s5807_s1] sm:$0x3f] }
 0x152   :  { %v538_v7 = vpop.f32.mrf.mxu1 }
 0x153   :  { %v539_v48 = vadd.f32 %v538_v7, %v295_v8  ;;  %v2292_v8 = vsub.s32 1, %v5417_v52 }
 0x157   :  { %v639_v5 = vpop.f32.mrf.mxu0 }
 0x158   :  { %v786_v37 = vadd.f32 %v639_v5, %v395_v31 }
 0x159   :  { %v641_v6 = vpop.f32.mrf.mxu0 }
 0x15a   :  { %v787_v40 = vadd.f32 %v641_v6, %v397_v34  ;;  %v2296_v6 = vsub.s32 2, %v5417_v52 }
 0x15c   :  { %v710_v3 = vpop.f32.mrf.mxu1  ;;  %v5432_v31 = vrot.slane %v36_v63, %v2296_v6 }
 0x15d   :  { %v788_v41 = vadd.f32 %v710_v3, %v466_v33 }
 0x15e   :  { %v712_v11 = vpop.f32.mrf.mxu1 }
 0x15f   :  { %v789_v44 = vadd.f32 %v712_v11, %v468_v36 }
 0x160   :  { %v781_v12 = vpop.f32.mrf.mxu0 }
 0x161   :  { %v790_v56 = vadd.f32 %v781_v12, %v537_v47 }
 0x162   :  { %v783_v14 = vpop.f32.mrf.mxu0 }
 0x163   :  { %v791_v57 = vadd.f32 %v783_v14, %v539_v48  ;;  %v5425_v14 = vrot.slane %v36_v63, %v2288_v1 }
 0x167   :  { %v890_v13 = vpop.f32.mrf.mxu1 }
 0x168   :  { %v961_v16 = vpop.f32.mrf.mxu0  ;;  %v1037_v45 = vadd.f32 %v890_v13, %v786_v37 }
 0x169   :  { %v892_v15 = vpop.f32.mrf.mxu1  ;;  %v1039_v49 = vadd.f32 %v961_v16, %v788_v41  ;;  %v5427_v16 = vrot.slane %v36_v63, %v2292_v8 }
 0x16a   :  { %v963_v18 = vpop.f32.mrf.mxu0  ;;  %v1038_v50 = vadd.f32 %v892_v15, %v787_v40 }
 0x16b   :  { %v1040_v54 = vadd.f32 %v963_v18, %v789_v44  ;;  %v2300_v18 = vsub.s32 3, %v5417_v52 }
 0x16c   :  { %v1032_v17 = vpop.f32.mrf.mxu1 }
 0x16d   :  { %v1114_v20 = vpop.f32.mrf.mxu0  ;;  %v1041_v2 = vadd.f32 %v1032_v17, %v790_v56  ;;  %v5445_v41 = vrot.slane %v36_v63, %v2300_v18 }
 0x16e   :  { %v1034_v19 = vpop.f32.mrf.mxu1  ;;  %v1261_v55 = vadd.f32 %v1114_v20, %v1037_v45 }
 0x16f   :  { %v1116_v22 = vpop.f32.mrf.mxu0  ;;  %v1042_v7 = vadd.f32 %v1034_v19, %v791_v57 }
 0x170   :  { %v1185_v21 = vpop.f32.mrf.mxu1  ;;  %v1262_v60 = vadd.f32 %v1116_v22, %v1038_v50 }
 0x171   :  { %v1256_v24 = vpop.f32.mrf.mxu0  ;;  %v1263_v61 = vadd.f32 %v1185_v21, %v1039_v49 }
 0x172   :  { %v1187_v23 = vpop.f32.mrf.mxu1  ;;  %v1265_v17 = vadd.f32 %v1256_v24, %v1041_v2  ;;  %v2308_v24 = vsub.s32 5, %v5417_v52 }
 0x173   :  { %v1258_v26 = vpop.f32.mrf.mxu0  ;;  %v1264_v9 = vadd.f32 %v1187_v23, %v1040_v54 }
 0x174   :  { %v1266_v19 = vadd.f32 %v1258_v26, %v1042_v7  ;;  %v5455_v54 = vrot.slane %v36_v63, %v2308_v24 }
 0x175   :  { %v1450_v28 = vpop.f32.mrf.mxu0 }
 0x176   :  { %v1528_v11 = vadd.f32 %v1450_v28, %v1263_v61 }
 0x177   :  { %v1379_v25 = vpop.f32.mrf.mxu1  ;;  %v1452_v30 = vpop.f32.mrf.mxu0 }
 0x178   :  { %v1526_v62 = vadd.f32 %v1379_v25, %v1261_v55  ;;  %v1529_v20 = vadd.f32 %v1452_v30, %v1264_v9 }
 0x179   :  { %v1381_v27 = vpop.f32.mrf.mxu1 }
 0x17a   :  { %v1527_v10 = vadd.f32 %v1381_v27, %v1262_v60 }
 0x17c   :  { %v5415_v29 = vpop.f32.mrf.mxu1 }
 0x17d   :  { %v1530_v36 = vadd.f32 %v5415_v29, %v1265_v17 }
 0x17e   :  { %v1523_v35 = vpop.f32.mrf.mxu1 }
 0x17f   :  { %v1531_v30 = vadd.f32 %v1523_v35, %v1266_v19  ;;  %v2350_v19 = vld [vmem:[%s5810_s4] sm:$0xff] }
 0x180   :  { %v1630_v32 = vpop.f32.mrf.mxu0 }
 0x181   :  { %v1777_v0 = vadd.f32 %v1630_v32, %v1526_v62 }
 0x182   :  { %v1632_v39 = vpop.f32.mrf.mxu0 }
 0x183   :  { %v1778_v12 = vadd.f32 %v1632_v39, %v1527_v10 }
 0x184   :  { %v1701_v38 = vpop.f32.mrf.mxu1 }
 0x185   :  { %v1779_v21 = vadd.f32 %v1701_v38, %v1528_v11  ;;  %v2304_v38 = vsub.s32 4, %v5417_v52 }
 0x186   :  { %v1703_v46 = vpop.f32.mrf.mxu1 }
 0x187   :  { %v1780_v28 = vadd.f32 %v1703_v46, %v1529_v20  ;;  %v5453_v52 = vrot.slane %v36_v63, %v2304_v38 }
 0x188   :  { %v1772_v43 = vpop.f32.mrf.mxu0 }
 0x189   :  { %v1781_v42 = vadd.f32 %v1772_v43, %v1530_v36 }
 0x18a   :  { %v1774_v53 = vpop.f32.mrf.mxu0 }
 0x18b   :  { %v1782_v44 = vadd.f32 %v1774_v53, %v1531_v30 }
 0x190   :  { %v1952_v58 = vpop.f32.mrf.mxu0 }
 0x191   :  { %v2030_v32 = vadd.f32 %v1952_v58, %v1779_v21  ;;  %v2346_v21 = vld [vmem:[%s5809_s3] sm:$0xff] }
 0x192   :  { %v1954_v5 = vpop.f32.mrf.mxu0 }
 0x193   :  { %v1881_v51 = vpop.f32.mrf.mxu1  ;;  %v2031_v26 = vadd.f32 %v1954_v5, %v1780_v28 }
 0x194   :  { %v2028_v13 = vadd.f32 %v1881_v51, %v1777_v0 }
 0x195   :  { %v1883_v59 = vpop.f32.mrf.mxu1 }
 0x196   :  { %v2029_v22 = vadd.f32 %v1883_v59, %v1778_v12 }
 0x198   :  { %v2023_v3 = vpop.f32.mrf.mxu1 }
 0x199   :  { %v2032_v49 = vadd.f32 %v2023_v3, %v1781_v42  ;;  %v5081_v3 = vmov 0  }
 0x19a   :  { %v2025_v25 = vpop.f32.mrf.mxu1  ;;  %5044 = vset.pattern.permute.xlu0 %v5081_v3  ;;  %5045 = vset.pattern.permute.xlu1 %v5081_v3 }
 0x19b   :  { %v2033_v50 = vadd.f32 %v2025_v25, %v1782_v44 }
 0x19c   :  { %v2132_v15 = vpop.f32.mrf.mxu0 }
 0x19d   :  { %v5430_v23 = vadd.f32 %v2132_v15, %v2028_v13 }
 0x19e   :  { %v2134_v27 = vpop.f32.mrf.mxu0 }
 0x19f   :  { %v2316_v33 = vmul.f32 %v5425_v14, %v5430_v23  ;;  %v5436_v34 = vadd.f32 %v2134_v27, %v2029_v22 }
 0x1a0   :  { %v2203_v37 = vpop.f32.mrf.mxu1 }
 0x1a1   :  { %v2317_v39 = vmul.f32 %v5427_v16, %v5436_v34  ;;  %v5443_v40 = vadd.f32 %v2203_v37, %v2030_v32  ;;  %v2330_v45 = vmul.f32 %v2316_v33, %v5430_v23 }
 0x1a2   :  { %v2205_v46 = vpop.f32.mrf.mxu1 }
 0x1a3   :  { %v2322_v29 = vadd.f32 %v2317_v39, %v2316_v33  ;;  %v2331_v35 = vmul.f32 %v2317_v39, %v5436_v34  ;;  %v2318_v47 = vmul.f32 %v5432_v31, %v5443_v40  ;;  %v5451_v48 = vadd.f32 %v2205_v46, %v2031_v26 }
 0x1a4   :  { %v2274_v51 = vpop.f32.mrf.mxu0 }
 0x1a5   :  { %v2336_v43 = vadd.f32 %v2331_v35, %v2330_v45  ;;  %v2323_v53 = vadd.f32 %v2322_v29, %v2318_v47  ;;  %v2332_v55 = vmul.f32 %v2318_v47, %v5443_v40  ;;  %v2319_v56 = vmul.f32 %v5445_v41, %v5451_v48 }
 0x1a6   :  { %v2283_v57 = vadd.f32 %v2274_v51, %v2032_v49  ;;  %v2276_v58 = vpop.f32.mrf.mxu0 }
 0x1a7   :  { %v2337_v59 = vadd.f32 %v2336_v43, %v2332_v55  ;;  %v2333_v60 = vmul.f32 %v2319_v56, %v5451_v48  ;;  %v2284_v61 = vadd.f32 %v2276_v58, %v2033_v50  ;;  %v2324_v62 = vadd.f32 %v2323_v53, %v2319_v56 }
 0x1a8   :  { %v2320_v1 = vmul.f32 %v5453_v52, %v2283_v57 }
 0x1a9   :  { %v2321_v8 = vmul.f32 %v5455_v54, %v2284_v61  ;;  %v2338_v63 = vadd.f32 %v2337_v59, %v2333_v60 }
 0x1aa   :  { %v2334_v9 = vmul.f32 %v2320_v1, %v2283_v57  ;;  %v2325_v10 = vadd.f32 %v2324_v62, %v2320_v1 }
 0x1ab   :  { %v2335_v0 = vmul.f32 %v2321_v8, %v2284_v61 }
 0x1ac   :  { %v2326_v2 = vadd.f32 %v2325_v10, %v2321_v8  ;;  %v2339_v7 = vadd.f32 %v2338_v63, %v2334_v9  ;;  %v4995_v10 = vld [vmem:[%s5811_s5 + $0x8] sm:$0xff] }
 0x1ae   :  { %2327 = vadd.xlane.f32.xlu0 %v2326_v2  ;;  %v2340_v5 = vadd.f32 %v2339_v7, %v2335_v0 }
 0x1b0   :  { %2341 = vadd.xlane.f32.xlu1 %v2340_v5 }
 0x237   :  { %v2328_v6 = vpop.xlane.xlu0 %2327 }
 0x238   :  { %v2329_v11 = vmul.f32 0.001953125, %v2328_v6 }
 0x239   :  { %v2342_v12 = vpop.xlane.xlu1 %2341 }
 0x23a   :  { %v2344_v13 = vmul.f32 %v2329_v11, %v2329_v11  ;;  %v2343_v15 = vmul.f32 0.001953125, %v2342_v12 }
 0x23c   :  { %v2345_v18 = vsub.f32 %v2343_v15, %v2344_v13 }
 0x23e   :  { %v2347_v20 = vadd.f32 1e-05, %v2345_v18 }
 0x240   :  { %5046 = vrsqrt.f32 %v2347_v20 }
 0x24d   :  { %v5047_v22 = vpop.eup %5046 }
 0x24e   :  { %v2349_v17 = vmul.f32 %v5047_v22, %v2346_v21 }
 0x250   :  { %2357 = vperm.xlu0 %5044, %v2349_v17   ;;  %v2351_v25 = vmul.f32 %v2349_v17, %v2329_v11 }
 0x252   :  { %v2352_v27 = vsub.f32 %v2350_v19, %v2351_v25  ;;  %v2402_v19 = vld [vmem:[%s5811_s5] sm:$0xff] }
 0x254   :  { %2368 = vperm.xlu1 %5045, %v2352_v27   ;;  %2898 = vrot.lane.b32.xlu0 %v5073_v4, %s5075_s29 }
 0x258   :  { %2412 = vrot.lane.b32.xlu1 %v5073_v4, %s5072_s17  ;;  %3648 = vrot.lane.b32.xlu0 %v5073_v4, %s5077_s11 }
 0x25c   :  { %2654 = vrot.lane.b32.xlu1 %v5073_v4, %s5074_s28  ;;  %4148 = vrot.lane.b32.xlu0 %v5073_v4, %s5079_s15 }
 0x260   :  { %3148 = vrot.lane.b32.xlu1 %v5073_v4, %s5076_s30 }
 0x264   :  { %3898 = vrot.lane.b32.xlu1 %v5073_v4, %s5078_s14 }
 0x2cb   :  { %v2358_v28 = vpop.permute.xlu0 %2357 }
 0x2cc   :  { %v2360_v32 = vmul.f32 %v2358_v28, %v5430_v23  ;;  %v2361_v33 = vmul.f32 %v2358_v28, %v5436_v34  ;;  %v2365_v36 = vmul.f32 %v2358_v28, %v2284_v61  ;;  %v2362_v26 = vmul.f32 %v2358_v28, %v5443_v40 }
 0x2cd   :  { %v2363_v42 = vmul.f32 %v2358_v28, %v5451_v48  ;;  %v2364_v34 = vmul.f32 %v2358_v28, %v2283_v57 }
 0x2cf   :  { %v2369_v30 = vpop.permute.xlu1 %2368  ;;  %v5599_v57 = vpop.permute.xlu0 %2898 }
 0x2d0   :  { %v2371_v37 = vadd.f32 %v2369_v30, %v2360_v32  ;;  %v2372_v38 = vadd.f32 %v2369_v30, %v2361_v33  ;;  %v2376_v24 = vadd.f32 %v2369_v30, %v2365_v36  ;;  %v2373_v45 = vadd.f32 %v2369_v30, %v2362_v26 }
 0x2d1   :  { %v2374_v35 = vadd.f32 %v2369_v30, %v2363_v42  ;;  %v2375_v48 = vadd.f32 %v2369_v30, %v2364_v34 }
 0x2d2   :  { %v2377_v39 = vmax.f32 %v2371_v37, 0.0  ;;  %v2382_v44 = vmax.f32 %v2376_v24, 0.0  ;;  %v2378_v46 = vmax.f32 %v2372_v38, 0.0  ;;  %v2379_v40 = vmax.f32 %v2373_v45, 0.0 }
 0x2d3   :  { %v2380_v49 = vmax.f32 %v2374_v35, 0.0  ;;  %v2381_v51 = vmax.f32 %v2375_v48, 0.0  ;;  %v2413_v55 = vpop.permute.xlu1 %2412  ;;  %v5605_v59 = vpop.permute.xlu0 %3648 }
 0x2d4   :  { %v5488_v29 = vmul.f32 %v2377_v39, %v5425_v14  ;;  %v5491_v23 = vmul.f32 %v2382_v44, %v5455_v54  ;;  %v5498_v47 = vmul.f32 %v2378_v46, %v5427_v16  ;;  %v5505_v50 = vmul.f32 %v2379_v40, %v5432_v31  ;;  %v5002_v39 = vld [vmem:[%s5811_s5 + $0x10] sm:$0xff] }
 0x2d5   :  { %v5508_v43 = vmul.f32 %v2380_v49, %v5445_v41  ;;  %v5515_v53 = vmul.f32 %v2381_v51, %v5453_v52 }
 0x2d6   :  { %2414 = vrot.lane.b32.xlu1 %v5488_v29, %s5072_s17  ;;  %2424 = vrot.lane.b32.xlu0 %v5491_v23, %s5072_s17 }
 0x2d7   :  { %v2655_v56 = vpop.permute.xlu1 %2654  ;;  %v5611_v61 = vpop.permute.xlu0 %4148 }
 0x2da   :  { %2416 = vrot.lane.b32.xlu1 %v5498_v47, %s5072_s17  ;;  %2658 = vrot.lane.b32.xlu0 %v5498_v47, %s5074_s28 }
 0x2db   :  { %v5603_v58 = vpop.permute.xlu1 %3148 }
 0x2de   :  { %2418 = vrot.lane.b32.xlu1 %v5505_v50, %s5072_s17  ;;  %2662 = vrot.lane.b32.xlu0 %v5508_v43, %s5074_s28 }
 0x2df   :  { %v5609_v60 = vpop.permute.xlu1 %3898 }
 0x2e2   :  { %2420 = vrot.lane.b32.xlu1 %v5508_v43, %s5072_s17  ;;  %2664 = vrot.lane.b32.xlu0 %v5515_v53, %s5074_s28 }
 0x2e6   :  { %2422 = vrot.lane.b32.xlu1 %v5515_v53, %s5072_s17  ;;  %2900 = vrot.lane.b32.xlu0 %v5488_v29, %s5075_s29 }
 0x2ea   :  { %2656 = vrot.lane.b32.xlu1 %v5488_v29, %s5074_s28  ;;  %2906 = vrot.lane.b32.xlu0 %v5508_v43, %s5075_s29 }
 0x2ee   :  { %2660 = vrot.lane.b32.xlu1 %v5505_v50, %s5074_s28  ;;  %2910 = vrot.lane.b32.xlu0 %v5491_v23, %s5075_s29 }
 0x2f2   :  { %2666 = vrot.lane.b32.xlu1 %v5491_v23, %s5074_s28  ;;  %3152 = vrot.lane.b32.xlu0 %v5498_v47, %s5076_s30 }
 0x2f6   :  { %2902 = vrot.lane.b32.xlu1 %v5498_v47, %s5075_s29  ;;  %3156 = vrot.lane.b32.xlu0 %v5508_v43, %s5076_s30 }
 0x2fa   :  { %2904 = vrot.lane.b32.xlu1 %v5505_v50, %s5075_s29  ;;  %3158 = vrot.lane.b32.xlu0 %v5515_v53, %s5076_s30 }
 0x2fe   :  { %2908 = vrot.lane.b32.xlu1 %v5515_v53, %s5075_s29  ;;  %3638 = vrot.lane.b32.xlu0 %v5498_v47, %s5077_s11 }
 0x302   :  { %3150 = vrot.lane.b32.xlu1 %v5488_v29, %s5076_s30  ;;  %3642 = vrot.lane.b32.xlu0 %v5508_v43, %s5077_s11 }
 0x306   :  { %3154 = vrot.lane.b32.xlu1 %v5505_v50, %s5076_s30  ;;  %3636 = vrot.lane.b32.xlu0 %v5488_v29, %s5077_s11 }
 0x30a   :  { %3160 = vrot.lane.b32.xlu1 %v5491_v23, %s5076_s30  ;;  %3890 = vrot.lane.b32.xlu0 %v5505_v50, %s5078_s14 }
 0x30e   :  { %3640 = vrot.lane.b32.xlu1 %v5505_v50, %s5077_s11  ;;  %3892 = vrot.lane.b32.xlu0 %v5508_v43, %s5078_s14 }
 0x312   :  { %3644 = vrot.lane.b32.xlu1 %v5515_v53, %s5077_s11  ;;  %3896 = vrot.lane.b32.xlu0 %v5491_v23, %s5078_s14 }
 0x316   :  { %3646 = vrot.lane.b32.xlu1 %v5491_v23, %s5077_s11  ;;  %4138 = vrot.lane.b32.xlu0 %v5498_v47, %s5079_s15 }
 0x31a   :  { %3888 = vrot.lane.b32.xlu1 %v5498_v47, %s5078_s14  ;;  %4142 = vrot.lane.b32.xlu0 %v5508_v43, %s5079_s15 }
 0x31e   :  { %3886 = vrot.lane.b32.xlu1 %v5488_v29, %s5078_s14  ;;  %4136 = vrot.lane.b32.xlu0 %v5488_v29, %s5079_s15 }
 0x322   :  { %3894 = vrot.lane.b32.xlu1 %v5515_v53, %s5078_s14  ;;  %4390 = vrot.lane.b32.xlu0 %v5505_v50, %s5080_s16 }
 0x326   :  { %4140 = vrot.lane.b32.xlu1 %v5505_v50, %s5079_s15  ;;  %4392 = vrot.lane.b32.xlu0 %v5508_v43, %s5080_s16 }
 0x32a   :  { %4144 = vrot.lane.b32.xlu1 %v5515_v53, %s5079_s15  ;;  %4396 = vrot.lane.b32.xlu0 %v5491_v23, %s5080_s16 }
 0x32e   :  { %4146 = vrot.lane.b32.xlu1 %v5491_v23, %s5079_s15 }
 0x332   :  { %4388 = vrot.lane.b32.xlu1 %v5498_v47, %s5080_s16 }
 0x336   :  { %4386 = vrot.lane.b32.xlu1 %v5488_v29, %s5080_s16 }
 0x33a   :  { %4394 = vrot.lane.b32.xlu1 %v5515_v53, %s5080_s16 }
 0x33e   :  { %4398 = vrot.lane.b32.xlu1 %v5073_v4, %s5080_s16 }
 0x348   :  { %v2415_v62 = vpop.permute.xlu1 %2414  ;;  %v2425_v1 = vpop.permute.xlu0 %2424 }
 0x349   :  { %v2426_v0 = vsel %vm68_vm0, %v2413_v55, %v2415_v62 }
 0x34c   :  { %v2417_v8 = vpop.permute.xlu1 %2416  ;;  %v2659_v63 = vpop.permute.xlu0 %2658 }
 0x34d   :  { %v2427_v9 = vsel %vm68_vm0, %v2415_v62, %v2417_v8  ;;  %v5006_v62 = vld [vmem:[%s5811_s5 + $0x18] sm:$0xff] }
 0x34e   :  { %2471 = vmatprep.subr.mxu1 %v2427_v9 }
 0x34f   :  { %2472 = vmatpush1.msra.mxu1 %v2426_v0 }
 0x350   :  { %v2419_v2 = vpop.permute.xlu1 %2418  ;;  %4996 = vmatmul.mubr.msk.f32.vlgmr.msra.gmra.mxu1 %vm81_vm1, %v4995_v10  ;;  %v2663_v7 = vpop.permute.xlu0 %2662 }
 0x351   :  { %2647 = vmatprep.mubr.f32.mxu1 %v5073_v4  ;;  %v2428_v11 = vsel %vm68_vm0, %v2417_v8, %v2419_v2 }
 0x354   :  { %v2421_v5 = vpop.permute.xlu1 %2420  ;;  %v2665_v3 = vpop.permute.xlu0 %2664 }
 0x355   :  { %v2429_v6 = vsel %vm68_vm0, %v2419_v2, %v2421_v5  ;;  %v2672_v37 = vsel %vm312_vm2, %v2663_v7, %v2665_v3  ;;  %v5010_v2 = vld [vmem:[%s5811_s5 + $0x20] sm:$0xff] }
 0x356   :  { %2542 = vmatprep.subr.mxu0 %v2429_v6 }
 0x357   :  { %2543 = vmatpush1.msra.mxu0 %v2428_v11 }
 0x358   :  { %v2423_v12 = vpop.permute.xlu1 %2422  ;;  %4997 = vmatmul.mubr.msk.f32.vlgmr.msra.gmra.mxu0 %vm81_vm1, %v4995_v10  ;;  %v2901_v13 = vpop.permute.xlu0 %2900 }
 0x359   :  { %v2430_v15 = vsel %vm68_vm0, %v2421_v5, %v2423_v12  ;;  %v2431_v18 = vsel %vm68_vm0, %v2423_v12, %v2425_v1  ;;  %2747 = vmatprep.mubr.f32.mxu0 %v5073_v4  ;;  %v2912_v42 = vsel %vm557_vm3, %v5599_v57, %v2901_v13 }
 0x35a   :  { %2613 = vmatprep.subr.mxu1 %v2431_v18 }
 0x35b   :  { %2614 = vmatpush1.msra.mxu1 %v2430_v15 }
 0x35c   :  { %v2657_v20 = vpop.permute.xlu1 %2656  ;;  %4998 = vmatmul.mubr.msk.f32.vlgmr.msra.gmra.mxu1 %vm81_vm1, %v4995_v10  ;;  %v2907_v21 = vpop.permute.xlu0 %2906 }
 0x35d   :  { %v2668_v22 = vsel %vm312_vm2, %v2655_v56, %v2657_v20  ;;  %v2669_v17 = vsel %vm312_vm2, %v2657_v20, %v2659_v63  ;;  %2818 = vmatprep.mubr.f32.mxu1 %v5073_v4 }
 0x35e   :  { %2713 = vmatprep.subr.mxu0 %v2669_v17 }
 0x35f   :  { %2714 = vmatpush1.msra.mxu0 %v2668_v22 }
 0x360   :  { %v2661_v25 = vpop.permute.xlu1 %2660  ;;  %4999 = vmatmul.mubr.msk.f32.vlgmr.msra.gmra.mxu0 %vm81_vm1, %v2402_v19  ;;  %v2911_v27 = vpop.permute.xlu0 %2910 }
 0x361   :  { %v2670_v28 = vsel %vm312_vm2, %v2659_v63, %v2661_v25  ;;  %v2671_v32 = vsel %vm312_vm2, %v2661_v25, %v2663_v7  ;;  %2889 = vmatprep.mubr.f32.mxu0 %v5073_v4 }
 0x362   :  { %2784 = vmatprep.subr.mxu1 %v2671_v32 }
 0x363   :  { %2785 = vmatpush1.msra.mxu1 %v2670_v28 }
 0x364   :  { %v2667_v33 = vpop.permute.xlu1 %2666  ;;  %5000 = vmatmul.mubr.msk.f32.vlgmr.msra.gmra.mxu1 %vm81_vm1, %v2402_v19  ;;  %v3153_v36 = vpop.permute.xlu0 %3152 }
 0x365   :  { %v2673_v30 = vsel %vm312_vm2, %v2665_v3, %v2667_v33  ;;  %2991 = vmatprep.mubr.f32.mxu1 %v5073_v4 }
 0x366   :  { %2855 = vmatprep.subr.mxu0 %v2673_v30  ;;  %v5022_v30 = vld [vmem:[%s5811_s5 + $0x38] sm:$0xff] }
 0x367   :  { %2856 = vmatpush1.msra.mxu0 %v2672_v37 }
 0x368   :  { %v2903_v38 = vpop.permute.xlu1 %2902  ;;  %5001 = vmatmul.mubr.msk.f32.vlgmr.msra.gmra.mxu0 %vm81_vm1, %v2402_v19  ;;  %v3157_v24 = vpop.permute.xlu0 %3156 }
 0x369   :  { %v2913_v26 = vsel %vm557_vm3, %v2901_v13, %v2903_v38  ;;  %3062 = vmatprep.mubr.f32.mxu0 %v5073_v4 }
 0x36a   :  { %2957 = vmatprep.subr.mxu1 %v2913_v26 }
 0x36b   :  { %2958 = vmatpush1.msra.mxu1 %v2912_v42 }
 0x36c   :  { %v2905_v44 = vpop.permute.xlu1 %2904  ;;  %5003 = vmatmul.mubr.msk.f32.vlgmr.msra.gmra.mxu1 %vm81_vm1, %v5002_v39  ;;  %v3159_v45 = vpop.permute.xlu0 %3158 }
 0x36d   :  { %v2914_v46 = vsel %vm557_vm3, %v2903_v38, %v2905_v44  ;;  %v2915_v35 = vsel %vm557_vm3, %v2905_v44, %v2907_v21  ;;  %3133 = vmatprep.mubr.f32.mxu1 %v5073_v4  ;;  %v3166_v7 = vsel %vm808_vm4, %v3157_v24, %v3159_v45 }
 0x36e   :  { %3028 = vmatprep.subr.mxu0 %v2915_v35 }
 0x36f   :  { %3029 = vmatpush1.msra.mxu0 %v2914_v46 }
 0x370   :  { %v2909_v34 = vpop.permute.xlu1 %2908  ;;  %5004 = vmatmul.mubr.msk.f32.vlgmr.msra.gmra.mxu0 %vm81_vm1, %v5002_v39  ;;  %v3639_v40 = vpop.permute.xlu0 %3638 }
 0x371   :  { %v2916_v48 = vsel %vm557_vm3, %v2907_v21, %v2909_v34  ;;  %v2917_v49 = vsel %vm557_vm3, %v2909_v34, %v2911_v27  ;;  %3241 = vmatprep.mubr.f32.mxu0 %v5073_v4 }
 0x372   :  { %3099 = vmatprep.subr.mxu1 %v2917_v49 }
 0x373   :  { %3100 = vmatpush1.msra.mxu1 %v2916_v48 }
 0x374   :  { %v3151_v51 = vpop.permute.xlu1 %3150  ;;  %5005 = vmatmul.mubr.msk.f32.vlgmr.msra.gmra.mxu1 %vm81_vm1, %v5002_v39  ;;  %v3643_v55 = vpop.permute.xlu0 %3642 }
 0x375   :  { %v3162_v56 = vsel %vm808_vm4, %v5603_v58, %v3151_v51  ;;  %v3163_v57 = vsel %vm808_vm4, %v3151_v51, %v3153_v36  ;;  %3312 = vmatprep.mubr.f32.mxu1 %v5073_v4 }
 0x376   :  { %3207 = vmatprep.subr.mxu0 %v3163_v57 }
 0x377   :  { %3208 = vmatpush1.msra.mxu0 %v3162_v56 }
 0x378   :  { %v3155_v1 = vpop.permute.xlu1 %3154  ;;  %5007 = vmatmul.mubr.msk.f32.vlgmr.msra.gmra.mxu0 %vm81_vm1, %v5006_v62  ;;  %v3637_v8 = vpop.permute.xlu0 %3636 }
 0x379   :  { %v3164_v63 = vsel %vm808_vm4, %v3153_v36, %v3155_v1  ;;  %v3165_v9 = vsel %vm808_vm4, %v3155_v1, %v3157_v24  ;;  %3383 = vmatprep.mubr.f32.mxu0 %v5073_v4 }
 0x37a   :  { %3278 = vmatprep.subr.mxu1 %v3165_v9  ;;  %v4693_v9 = vld [vmem:[%s5814_s8] sm:$0xff] }
 0x37b   :  { %3279 = vmatpush1.msra.mxu1 %v3164_v63  ;;  %v4694_v63 = vld [vmem:[%s5806_s0 + $0x8] sm:$0xff] }
 0x37c   :  { %5008 = vmatmul.mubr.msk.f32.vlgmr.msra.gmra.mxu1 %vm81_vm1, %v5006_v62  ;;  %3431 = vmatprep.subr.mxu1 %v5498_v47  ;;  %v3161_v58 = vpop.permute.xlu1 %3160  ;;  %v3891_v10 = vpop.permute.xlu0 %3890 }
 0x37d   :  { %3432 = vmatpush1.msra.mxu1 %v5488_v29  ;;  %v3167_v0 = vsel %vm808_vm4, %v3159_v45, %v3161_v58  ;;  %3465 = vmatprep.mubr.f32.mxu1 %v5073_v4  ;;  %v4697_v58 = vld [vmem:[%s5806_s0 + $0x20] sm:$0xff] }
 0x37e   :  { %3349 = vmatprep.subr.mxu0 %v3167_v0  ;;  %3573 = vmatprep.subr.mxu1 %v5491_v23  ;;  %v3650_v23 = vsel %vm1297_vm5, %v3637_v8, %v3639_v40  ;;  %v4695_v8 = vld [vmem:[%s5806_s0 + $0x10] sm:$0xff]  ;;  %v4696_v0 = vld [vmem:[%s5806_s0 + $0x18] sm:$0xff] }
 0x37f   :  { %3350 = vmatpush1.msra.mxu0 %v3166_v7 }
 0x380   :  { %5009 = vmatmul.mubr.msk.f32.vlgmr.msra.gmra.mxu0 %vm81_vm1, %v5006_v62  ;;  %5011 = vmatmul.mubr.msk.f32.vlgmr.msra.gmra.mxu1 %vm81_vm1, %v5010_v2  ;;  %v3641_v47 = vpop.permute.xlu1 %3640  ;;  %v3893_v29 = vpop.permute.xlu0 %3892 }
 0x381   :  { %3502 = vmatprep.subr.mxu0 %v5508_v43  ;;  %3574 = vmatpush1.msra.mxu1 %v5515_v53  ;;  %v3651_v5 = vsel %vm1297_vm5, %v3639_v40, %v3641_v47  ;;  %v3652_v53 = vsel %vm1297_vm5, %v3641_v47, %v3643_v55  ;;  %v3902_v32 = vsel %vm1548_vm6, %v3891_v10, %v3893_v29  ;;  %v5026_v40 = vld [vmem:[%s5811_s5 + $0x40] sm:$0xff] }
 0x382   :  { %3503 = vmatpush1.msra.mxu0 %v5505_v50  ;;  %3536 = vmatprep.mubr.f32.mxu0 %v5073_v4  ;;  %v5014_v50 = vld [vmem:[%s5811_s5 + $0x28] sm:$0xff] }
 0x383   :  { %3695 = vmatprep.subr.mxu0 %v3651_v5  ;;  %3607 = vmatprep.mubr.f32.mxu1 %v5073_v4 }
 0x384   :  { %5012 = vmatmul.mubr.msk.f32.vlgmr.msra.gmra.mxu0 %vm81_vm1, %v5010_v2  ;;  %v3645_v3 = vpop.permute.xlu1 %3644  ;;  %5013 = vmatmul.mubr.msk.f32.vlgmr.msra.gmra.mxu1 %vm81_vm1, %v5010_v2  ;;  %v3897_v6 = vpop.permute.xlu0 %3896  ;;  %v4698_v2 = vld [vmem:[%s5806_s0 + $0x28] sm:$0xff] }
 0x385   :  { %3696 = vmatpush1.msra.mxu0 %v3650_v23  ;;  %v3653_v43 = vsel %vm1297_vm5, %v3643_v55, %v3645_v3  ;;  %3729 = vmatprep.mubr.f32.mxu0 %v5073_v4  ;;  %v3905_v19 = vsel %vm1548_vm6, %v3897_v6, %v5609_v60 }
 0x386   :  { %3766 = vmatprep.subr.mxu1 %v3653_v43  ;;  %3800 = vmatprep.mubr.f32.mxu1 %v5073_v4 }
 0x387   :  { %3767 = vmatpush1.msra.mxu1 %v3652_v53 }
 0x388   :  { %5015 = vmatmul.mubr.msk.f32.vlgmr.msra.gmra.mxu0 %vm81_vm1, %v5014_v50  ;;  %v3647_v11 = vpop.permute.xlu1 %3646  ;;  %5016 = vmatmul.mubr.msk.f32.vlgmr.msra.gmra.mxu1 %vm81_vm1, %v5014_v50  ;;  %v4139_v15 = vpop.permute.xlu0 %4138 }
 0x389   :  { %v3654_v12 = vsel %vm1297_vm5, %v3645_v3, %v3647_v11  ;;  %v3655_v13 = vsel %vm1297_vm5, %v3647_v11, %v5605_v59  ;;  %3871 = vmatprep.mubr.f32.mxu0 %v5073_v4  ;;  %3979 = vmatprep.mubr.f32.mxu1 %v5073_v4  ;;  %v5018_v59 = vld [vmem:[%s5811_s5 + $0x30] sm:$0xff] }
 0x38a   :  { %3837 = vmatprep.subr.mxu0 %v3655_v13 }
 0x38b   :  { %3838 = vmatpush1.msra.mxu0 %v3654_v12 }
 0x38c   :  { %5017 = vmatmul.mubr.msk.f32.vlgmr.msra.gmra.mxu0 %vm81_vm1, %v5014_v50  ;;  %v3889_v18 = vpop.permute.xlu1 %3888  ;;  %v4143_v22 = vpop.permute.xlu0 %4142 }
 0x38d   :  { %v3901_v20 = vsel %vm1548_vm6, %v3889_v18, %v3891_v10  ;;  %4050 = vmatprep.mubr.f32.mxu0 %v5073_v4  ;;  %v4699_v10 = vld [vmem:[%s5806_s0 + $0x30] sm:$0xff] }
 0x38e   :  { %3945 = vmatprep.subr.mxu1 %v3901_v20 }
 0x390   :  { %v3887_v21 = vpop.permute.xlu1 %3886  ;;  %v4137_v33 = vpop.permute.xlu0 %4136 }
 0x391   :  { %v3900_v17 = vsel %vm1548_vm6, %v3887_v21, %v3889_v18  ;;  %v4150_v37 = vsel %vm1799_vm7, %v4137_v33, %v4139_v15 }
 0x392   :  { %3946 = vmatpush1.msra.mxu1 %v3900_v17 }
 0x393   :  { %5019 = vmatmul.mubr.msk.f32.vlgmr.msra.gmra.mxu1 %vm81_vm1, %v5018_v59  ;;  %4087 = vmatprep.subr.mxu1 %v3905_v19 }
 0x394   :  { %v3895_v25 = vpop.permute.xlu1 %3894  ;;  %4121 = vmatprep.mubr.f32.mxu1 %v5073_v4  ;;  %v4391_v45 = vpop.permute.xlu0 %4390 }
 0x395   :  { %v3904_v27 = vsel %vm1548_vm6, %v3895_v25, %v3897_v6  ;;  %v3903_v28 = vsel %vm1548_vm6, %v3893_v29, %v3895_v25 }
 0x396   :  { %4016 = vmatprep.subr.mxu0 %v3903_v28  ;;  %4088 = vmatpush1.msra.mxu1 %v3904_v27 }
 0x397   :  { %4017 = vmatpush1.msra.mxu0 %v3902_v32  ;;  %5021 = vmatmul.mubr.msk.f32.vlgmr.msra.gmra.mxu1 %vm81_vm1, %v5018_v59 }
 0x398   :  { %5020 = vmatmul.mubr.msk.f32.vlgmr.msra.gmra.mxu0 %vm81_vm1, %v5018_v59  ;;  %v4141_v60 = vpop.permute.xlu1 %4140  ;;  %4300 = vmatprep.mubr.f32.mxu1 %v5073_v4  ;;  %v4393_v48 = vpop.permute.xlu0 %4392 }
 0x399   :  { %v4151_v36 = vsel %vm1799_vm7, %v4139_v15, %v4141_v60  ;;  %4229 = vmatprep.mubr.f32.mxu0 %v5073_v4  ;;  %v4152_v26 = vsel %vm1799_vm7, %v4141_v60, %v4143_v22  ;;  %v4402_v55 = vsel %vm2050_vm8, %v4391_v45, %v4393_v48 }
 0x39a   :  { %4195 = vmatprep.subr.mxu0 %v4151_v36 }
 0x39b   :  { %4196 = vmatpush1.msra.mxu0 %v4150_v37 }
 0x39c   :  { %5023 = vmatmul.mubr.msk.f32.vlgmr.msra.gmra.mxu0 %vm81_vm1, %v5022_v30  ;;  %v4145_v38 = vpop.permute.xlu1 %4144  ;;  %v4397_v56 = vpop.permute.xlu0 %4396 }
 0x39d   :  { %v4153_v24 = vsel %vm1799_vm7, %v4143_v22, %v4145_v38  ;;  %4371 = vmatprep.mubr.f32.mxu0 %v5073_v4 }
 0x39e   :  { %4266 = vmatprep.subr.mxu1 %v4153_v24 }
 0x39f   :  { %4267 = vmatpush1.msra.mxu1 %v4152_v26 }
 0x3a0   :  { %5024 = vmatmul.mubr.msk.f32.vlgmr.msra.gmra.mxu1 %vm81_vm1, %v5022_v30  ;;  %v4147_v39 = vpop.permute.xlu1 %4146 }
 0x3a1   :  { %v4154_v42 = vsel %vm1799_vm7, %v4145_v38, %v4147_v39  ;;  %v4155_v44 = vsel %vm1799_vm7, %v4147_v39, %v5611_v61  ;;  %4479 = vmatprep.mubr.f32.mxu1 %v5073_v4 }
 0x3a2   :  { %4337 = vmatprep.subr.mxu0 %v4155_v44 }
 0x3a3   :  { %4338 = vmatpush1.msra.mxu0 %v4154_v42 }
 0x3a4   :  { %5025 = vmatmul.mubr.msk.f32.vlgmr.msra.gmra.mxu0 %vm81_vm1, %v5022_v30  ;;  %v4389_v46 = vpop.permute.xlu1 %4388 }
 0x3a5   :  { %v4401_v35 = vsel %vm2050_vm8, %v4389_v46, %v4391_v45  ;;  %4550 = vmatprep.mubr.f32.mxu0 %v5073_v4 }
 0x3a6   :  { %4445 = vmatprep.subr.mxu1 %v4401_v35 }
 0x3a8   :  { %v4387_v34 = vpop.permute.xlu1 %4386 }
 0x3a9   :  { %v4400_v61 = vsel %vm2050_vm8, %v4387_v34, %v4389_v46 }
 0x3aa   :  { %4446 = vmatpush1.msra.mxu1 %v4400_v61 }
 0x3ab   :  { %5027 = vmatmul.mubr.msk.f32.vlgmr.msra.gmra.mxu1 %vm81_vm1, %v5026_v40 }
 0x3ac   :  { %v4395_v49 = vpop.permute.xlu1 %4394  ;;  %4621 = vmatprep.mubr.f32.mxu1 %v5073_v4 }
 0x3ad   :  { %v4403_v51 = vsel %vm2050_vm8, %v4393_v48, %v4395_v49  ;;  %v4404_v1 = vsel %vm2050_vm8, %v4395_v49, %v4397_v56 }
 0x3ae   :  { %4516 = vmatprep.subr.mxu0 %v4403_v51 }
 0x3af   :  { %4517 = vmatpush1.msra.mxu0 %v4402_v55 }
 0x3b0   :  { %5028 = vmatmul.mubr.msk.f32.vlgmr.msra.gmra.mxu0 %vm81_vm1, %v5026_v40  ;;  %v4399_v57 = vpop.permute.xlu1 %4398  ;;  %4733 = vmatprep.subr.mxu0 %v4695_v8 }
 0x3b1   :  { %v4405_v62 = vsel %vm2050_vm8, %v4397_v56, %v4399_v57  ;;  %4767 = vmatprep.mubr.f32.mxu0 %v5073_v4  ;;  %4734 = vmatpush1.msra.mxu0 %v4694_v63 }
 0x3b2   :  { %4587 = vmatprep.subr.mxu1 %v4405_v62  ;;  %4875 = vmatprep.subr.mxu0 %v4699_v10 }
 0x3b3   :  { %4588 = vmatpush1.msra.mxu1 %v4404_v1 }
 0x3b4   :  { %5029 = vmatmul.mubr.msk.f32.vlgmr.msra.gmra.mxu1 %vm81_vm1, %v5026_v40  ;;  %4804 = vmatprep.subr.mxu1 %v4697_v58 }
 0x3b5   :  { %4838 = vmatprep.mubr.f32.mxu1 %v5073_v4  ;;  %5030 = vmatmul.mubr.msk.f32.vlgmr.msra.gmra.mxu0 %vm81_vm1, %v4693_v9 }
 0x3b6   :  { %4805 = vmatpush1.msra.mxu1 %v4696_v0  ;;  %4876 = vmatpush1.msra.mxu0 %v4698_v2 }
 0x3b7   :  { %4909 = vmatprep.mubr.f32.mxu0 %v5073_v4 }
 0x3b8   :  { %5031 = vmatmul.mubr.msk.f32.vlgmr.msra.gmra.mxu1 %vm81_vm1, %v4693_v9 }
 0x3b9   :  { %5032 = vmatmul.mubr.msk.f32.vlgmr.msra.gmra.mxu0 %vm81_vm1, %v4693_v9 }
 0x410   :  { %v2507_v7 = vpop.f32.mrf.mxu1 }
 0x412   :  { %v2509_v47 = vpop.f32.mrf.mxu1 }
 0x418   :  { %v2578_v29 = vpop.f32.mrf.mxu0 }
 0x41a   :  { %v2580_v23 = vpop.f32.mrf.mxu0 }
 0x41c   :  { %v2649_v5 = vpop.f32.mrf.mxu1 }
 0x41e   :  { %v2651_v3 = vpop.f32.mrf.mxu1 }
 0x420   :  { %v2749_v6 = vpop.f32.mrf.mxu0 }
 0x421   :  { %v2750_v44 = vadd.f32 %v2749_v6, %v2507_v7 }
 0x422   :  { %v2751_v50 = vpop.f32.mrf.mxu0 }
 0x423   :  { %v2752_v45 = vadd.f32 %v2751_v50, %v2509_v47 }
 0x424   :  { %v2820_v43 = vpop.f32.mrf.mxu1 }
 0x425   :  { %v2821_v35 = vadd.f32 %v2820_v43, %v2578_v29 }
 0x426   :  { %v2822_v53 = vpop.f32.mrf.mxu1 }
 0x427   :  { %v2823_v49 = vadd.f32 %v2822_v53, %v2580_v23 }
 0x428   :  { %v2891_v11 = vpop.f32.mrf.mxu0 }
 0x429   :  { %v2892_v62 = vadd.f32 %v2891_v11, %v2649_v5 }
 0x42a   :  { %v2893_v13 = vpop.f32.mrf.mxu0 }
 0x42b   :  { %v2894_v58 = vadd.f32 %v2893_v13, %v2651_v3 }
 0x42c   :  { %v2993_v12 = vpop.f32.mrf.mxu1 }
 0x42d   :  { %v3140_v40 = vadd.f32 %v2993_v12, %v2750_v44 }
 0x42e   :  { %v2995_v15 = vpop.f32.mrf.mxu1 }
 0x42f   :  { %v3141_v48 = vadd.f32 %v2995_v15, %v2752_v45 }
 0x430   :  { %v3064_v18 = vpop.f32.mrf.mxu0 }
 0x431   :  { %v3142_v51 = vadd.f32 %v3064_v18, %v2821_v35 }
 0x432   :  { %v3066_v20 = vpop.f32.mrf.mxu0 }
 0x433   :  { %v3143_v8 = vadd.f32 %v3066_v20, %v2823_v49 }
 0x434   :  { %v3135_v4 = vpop.f32.mrf.mxu1 }
 0x435   :  { %v3144_v2 = vadd.f32 %v3135_v4, %v2892_v62 }
 0x436   :  { %v3137_v21 = vpop.f32.mrf.mxu1 }
 0x437   :  { %v3145_v50 = vadd.f32 %v3137_v21, %v2894_v58 }
 0x438   :  { %v3243_v59 = vpop.f32.mrf.mxu0 }
 0x439   :  { %v3390_v56 = vadd.f32 %v3243_v59, %v3140_v40 }
 0x43a   :  { %v3245_v17 = vpop.f32.mrf.mxu0 }
 0x43b   :  { %v3391_v1 = vadd.f32 %v3245_v17, %v3141_v48 }
 0x43c   :  { %v3314_v22 = vpop.f32.mrf.mxu1 }
 0x43d   :  { %v3392_v63 = vadd.f32 %v3314_v22, %v3142_v51 }
 0x43e   :  { %v3316_v19 = vpop.f32.mrf.mxu1 }
 0x43f   :  { %v3393_v6 = vadd.f32 %v3316_v19, %v3143_v8 }
 0x440   :  { %v3385_v25 = vpop.f32.mrf.mxu0  ;;  %v3467_v27 = vpop.f32.mrf.mxu1 }
 0x441   :  { %v3614_v10 = vadd.f32 %v3467_v27, %v3390_v56  ;;  %v3394_v15 = vadd.f32 %v3385_v25, %v3144_v2 }
 0x442   :  { %v3387_v28 = vpop.f32.mrf.mxu0  ;;  %v3469_v32 = vpop.f32.mrf.mxu1 }
 0x443   :  { %v3615_v47 = vadd.f32 %v3469_v32, %v3391_v1  ;;  %v3395_v13 = vadd.f32 %v3387_v28, %v3145_v50 }
 0x444   :  { %v3538_v33 = vpop.f32.mrf.mxu0  ;;  %v3609_v60 = vpop.f32.mrf.mxu1 }
 0x445   :  { %v3616_v43 = vadd.f32 %v3538_v33, %v3392_v63  ;;  %v3618_v27 = vadd.f32 %v3609_v60, %v3394_v15 }
 0x446   :  { %v3540_v36 = vpop.f32.mrf.mxu0  ;;  %v3611_v30 = vpop.f32.mrf.mxu1 }
 0x447   :  { %v3617_v59 = vadd.f32 %v3540_v36, %v3393_v6  ;;  %v3619_v36 = vadd.f32 %v3611_v30, %v3395_v13 }
 0x448   :  { %v3731_v37 = vpop.f32.mrf.mxu0  ;;  %v3802_v38 = vpop.f32.mrf.mxu1 }
 0x449   :  { %v3878_v29 = vadd.f32 %v3731_v37, %v3614_v10  ;;  %v3880_v22 = vadd.f32 %v3802_v38, %v3616_v43 }
 0x44a   :  { %v3733_v24 = vpop.f32.mrf.mxu0  ;;  %v3804_v26 = vpop.f32.mrf.mxu1 }
 0x44b   :  { %v3879_v23 = vadd.f32 %v3733_v24, %v3615_v47  ;;  %v3881_v32 = vadd.f32 %v3804_v26, %v3617_v59  ;;  %v4922_v59 = vld [vmem:[%s5815_s9] sm:$0xff] }
 0x44c   :  { %v3873_v39 = vpop.f32.mrf.mxu0 }
 0x44d   :  { %v3882_v24 = vadd.f32 %v3873_v39, %v3618_v27 }
 0x44e   :  { %v3875_v46 = vpop.f32.mrf.mxu0 }
 0x44f   :  { %v3883_v26 = vadd.f32 %v3875_v46, %v3619_v36 }
 0x453   :  { %v3981_v42 = vpop.f32.mrf.mxu1 }
 0x454   :  { %v4128_v53 = vadd.f32 %v3981_v42, %v3878_v29 }
 0x455   :  { %v3983_v34 = vpop.f32.mrf.mxu1 }
 0x456   :  { %v4129_v5 = vadd.f32 %v3983_v34, %v3879_v23 }
 0x457   :  { %v4123_v55 = vpop.f32.mrf.mxu1 }
 0x458   :  { %v4052_v61 = vpop.f32.mrf.mxu0  ;;  %v4132_v45 = vadd.f32 %v4123_v55, %v3882_v24 }
 0x459   :  { %v4125_v9 = vpop.f32.mrf.mxu1  ;;  %v4130_v19 = vadd.f32 %v4052_v61, %v3880_v22 }
 0x45a   :  { %v4054_v57 = vpop.f32.mrf.mxu0  ;;  %v4133_v51 = vadd.f32 %v4125_v9, %v3883_v26 }
 0x45b   :  { %v4131_v42 = vadd.f32 %v4054_v57, %v3881_v32 }
 0x45c   :  { %v4231_v0 = vpop.f32.mrf.mxu0 }
 0x45d   :  { %v4378_v11 = vadd.f32 %v4231_v0, %v4128_v53 }
 0x45e   :  { %v4233_v12 = vpop.f32.mrf.mxu0 }
 0x45f   :  { %v4379_v17 = vadd.f32 %v4233_v12, %v4129_v5 }
 0x460   :  { %v4302_v7 = vpop.f32.mrf.mxu1 }
 0x461   :  { %v4380_v44 = vadd.f32 %v4302_v7, %v4130_v19 }
 0x462   :  { %v4304_v18 = vpop.f32.mrf.mxu1 }
 0x463   :  { %v4381_v35 = vadd.f32 %v4304_v18, %v4131_v42 }
 0x464   :  { %v4373_v20 = vpop.f32.mrf.mxu0 }
 0x465   :  { %v4382_v48 = vadd.f32 %v4373_v20, %v4132_v45 }
 0x466   :  { %v4375_v21 = vpop.f32.mrf.mxu0 }
 0x467   :  { %v4383_v1 = vadd.f32 %v4375_v21, %v4133_v51 }
 0x46b   :  { %v4481_v3 = vpop.f32.mrf.mxu1 }
 0x46c   :  { %v5778_v4 = vadd.f32 %v4481_v3, %v4378_v11  ;;  %v4668_v11 = vld [vmem:[%s5813_s7] sm:$0xff] }
 0x46d   :  { %v4483_v33 = vpop.f32.mrf.mxu1 }
 0x46e   :  { %v4634_v37 = vmul.f32 %v5778_v4, %v5425_v14  ;;  %v5782_v25 = vadd.f32 %v4483_v33, %v4379_v17 }
 0x470   :  { %v4635_v28 = vmul.f32 %v5782_v25, %v5427_v16  ;;  %v4552_v38 = vpop.f32.mrf.mxu0  ;;  %v4648_v34 = vmul.f32 %v4634_v37, %v5778_v4 }
 0x471   :  { %v4630_v60 = vadd.f32 %v4552_v38, %v4380_v44 }
 0x472   :  { %v4640_v40 = vadd.f32 %v4635_v28, %v4634_v37  ;;  %v4649_v61 = vmul.f32 %v4635_v28, %v5782_v25  ;;  %v4554_v14 = vpop.f32.mrf.mxu0 }
 0x473   :  { %v4636_v39 = vmul.f32 %v4630_v60, %v5432_v31  ;;  %v4631_v49 = vadd.f32 %v4554_v14, %v4381_v35 }
 0x474   :  { %v4654_v30 = vadd.f32 %v4649_v61, %v4648_v34  ;;  %v4623_v56 = vpop.f32.mrf.mxu1 }
 0x475   :  { %v4641_v57 = vadd.f32 %v4640_v40, %v4636_v39  ;;  %v4650_v16 = vmul.f32 %v4636_v39, %v4630_v60  ;;  %v4637_v55 = vmul.f32 %v4631_v49, %v5445_v41  ;;  %v4632_v62 = vadd.f32 %v4623_v56, %v4382_v48  ;;  %v4769_v3 = vpop.f32.mrf.mxu0 }
 0x476   :  { %v4625_v46 = vpop.f32.mrf.mxu1 }
 0x477   :  { %v4655_v8 = vadd.f32 %v4654_v30, %v4650_v16  ;;  %v4642_v63 = vadd.f32 %v4641_v57, %v4637_v55  ;;  %v4651_v58 = vmul.f32 %v4637_v55, %v4631_v49  ;;  %v4638_v10 = vmul.f32 %v4632_v62, %v5453_v52  ;;  %v4664_v52 = vld [vmem:[%s5812_s6] sm:$0xff]  ;;  %v4771_v13 = vpop.f32.mrf.mxu0  ;;  %s5082_s6 = smov [#allocation3]  }
 0x478   :  { %v4633_v0 = vadd.f32 %v4625_v46, %v4383_v1  ;;  %v4840_v27 = vpop.f32.mrf.mxu1  ;;  %s4952_s7 = sshll.u32 %s5082_s6, 4  ;;  %s4953_s7 = int_to_ptr.vmem [resolvable:$true] %s4952_s7 }
 0x479   :  { %v4656_v2 = vadd.f32 %v4655_v8, %v4651_v58  ;;  %v4652_v7 = vmul.f32 %v4638_v10, %v4632_v62  ;;  %v4643_v31 = vadd.f32 %v4642_v63, %v4638_v10  ;;  %v4911_v32 = vpop.f32.mrf.mxu0  ;;  %s5050_s9 = scalar_lea.vmem %s4953_s7, 768  ;;  %p5055_p1 = scmp.lt.s32.totalorder %s4953_s7, %s4953_s7 }
 0x47a   :  { %v4639_v9 = vmul.f32 %v4633_v0, %v5455_v54  ;;  %v4842_v48 = vpop.f32.mrf.mxu1  ;;  %p5051_p0 = scmp.ne.s32.totalorder %s4953_s7, %s5050_s9  ;;  %p5056_p2 = scmp.lt.s32.totalorder %s5050_s9, %s5050_s9 }
 0x47b   :  { %v4657_v47 = vadd.f32 %v4656_v2, %v4652_v7  ;;  %v4913_v39 = vpop.f32.mrf.mxu0 }
 0x47c   :  { %v4653_v29 = vmul.f32 %v4639_v9, %v4633_v0  ;;  %v4644_v6 = vadd.f32 %v4643_v31, %v4639_v9  ;;  %p5057_p3 = por %p5056_p2, %p5055_p1 }
 0x47e   :  { %4645 = vadd.xlane.f32.xlu0 %v4644_v6  ;;  %v4658_v43 = vadd.f32 %v4657_v47, %v4653_v29  ;;  %p5058_p4 = pnand %p5057_p3, %p5051_p0 }
 0x480   :  { %4659 = vadd.xlane.f32.xlu1 %v4658_v43 }
 0x507   :  { %v4646_v41 = vpop.xlane.xlu0 %4645 }
 0x508   :  { %v4647_v50 = vmul.f32 0.001953125, %v4646_v41 }
 0x509   :  { %v4660_v23 = vpop.xlane.xlu1 %4659 }
 0x50a   :  { %v4662_v53 = vmul.f32 %v4647_v50, %v4647_v50  ;;  %v4661_v12 = vmul.f32 0.001953125, %v4660_v23 }
 0x50c   :  { %v4663_v15 = vsub.f32 %v4661_v12, %v4662_v53 }
 0x50e   :  { %v4665_v18 = vadd.f32 1e-05, %v4663_v15 }
 0x510   :  { %5048 = vrsqrt.f32 %v4665_v18 }
 0x51d   :  { %v5049_v5 = vpop.eup %5048 }
 0x51e   :  { %v4667_v54 = vmul.f32 %v5049_v5, %v4664_v52 }
 0x520   :  { %4673 = vperm.xlu0 %5044, %v4667_v54   ;;  %v4669_v20 = vmul.f32 %v4667_v54, %v4647_v50 }
 0x522   :  { %v4670_v22 = vsub.f32 %v4668_v11, %v4669_v20 }
 0x524   :  { %4925 = vperm.xlu0 %5044, %v4922_v59   ;;  %4684 = vperm.xlu1 %5045, %v4670_v22  }
 0x59b   :  { %v4674_v17 = vpop.permute.xlu0 %4673 }
 0x59c   :  { %v4676_v19 = vmul.f32 %v4674_v17, %v5778_v4  ;;  %v4677_v33 = vmul.f32 %v4674_v17, %v5782_v25  ;;  %v4678_v21 = vmul.f32 %v4674_v17, %v4630_v60  ;;  %v4680_v37 = vmul.f32 %v4674_v17, %v4632_v62 }
 0x59d   :  { %v4679_v42 = vmul.f32 %v4674_v17, %v4631_v49  ;;  %v4681_v44 = vmul.f32 %v4674_v17, %v4633_v0 }
 0x59f   :  { %v4685_v24 = vpop.permute.xlu1 %4684  ;;  %v4926_v4 = vpop.permute.xlu0 %4925 }
 0x5a0   :  { %v4687_v36 = vadd.f32 %v4685_v24, %v4676_v19  ;;  %v4688_v28 = vadd.f32 %v4685_v24, %v4677_v33  ;;  %v4689_v38 = vadd.f32 %v4685_v24, %v4678_v21  ;;  %v4691_v45 = vadd.f32 %v4685_v24, %v4680_v37 }
 0x5a1   :  { %v4690_v35 = vadd.f32 %v4685_v24, %v4679_v42  ;;  %v4692_v26 = vadd.f32 %v4685_v24, %v4681_v44 }
 0x5a2   :  { %v4916_v34 = vadd.f32 %v4769_v3, %v4687_v36  ;;  %v4917_v40 = vadd.f32 %v4771_v13, %v4688_v28  ;;  %v4918_v61 = vadd.f32 %v4840_v27, %v4689_v38  ;;  %v4920_v14 = vadd.f32 %v4911_v32, %v4691_v45 }
 0x5a3   :  { %v4919_v51 = vadd.f32 %v4842_v48, %v4690_v35  ;;  %v4921_v25 = vadd.f32 %v4913_v39, %v4692_v26 }
 0x5a4   :  { %v4928_v60 = vadd.f32 %v4926_v4, %v4916_v34  ;;  %v4929_v30 = vadd.f32 %v4926_v4, %v4917_v40  ;;  %v4930_v56 = vadd.f32 %v4926_v4, %v4918_v61  ;;  %v4932_v49 = vadd.f32 %v4926_v4, %v4920_v14 }
 0x5a5   :  { %v4931_v57 = vadd.f32 %v4926_v4, %v4919_v51  ;;  %v4933_v16 = vadd.f32 %v4926_v4, %v4921_v25 }
 0x5a6   :  { %v4934_v55 = vmax.f32 %v4928_v60, 0.0  ;;  %v4935_v62 = vmax.f32 %v4929_v30, 0.0  ;;  %v4936_v1 = vmax.f32 %v4930_v56, 0.0  ;;  %v4938_v46 = vmax.f32 %v4932_v49, 0.0 }
 0x5a7   :  { %v4937_v8 = vmax.f32 %v4931_v57, 0.0  ;;  %v4939_v63 = vmax.f32 %v4933_v16, 0.0 }
 0x5a8   :  { %4940 = vst [vmem:[#allocation3] sm:$0xff] %v4934_v55  ;;  %4941 = vst [vmem:[#allocation3 + $0x8] sm:$0xff] %v4935_v62 }
 0x5a9   :  { %4942 = vst [vmem:[#allocation3 + $0x10] sm:$0xff] %v4936_v1  ;;  %4944 = vst [vmem:[#allocation3 + $0x20] sm:$0xff] %v4938_v46 }
 0x5aa   :  { %4943 = vst [vmem:[#allocation3 + $0x18] sm:$0xff] %v4937_v8  ;;  %4945 = vst [vmem:[#allocation3 + $0x28] sm:$0xff] %v4939_v63 }
 0x5ab   :  { %5061 = shalt.err (!%p5058_p4)
}
 0x5ac   :  { %4955 = dma.vmem_to_hbm [thread:$0]  %s4953_s7, 768, %s5816_s10, [#allocation4]  }
 0x5ad   :  { %5070 = dma.done.wait [#allocation4], 768  }
 0x5ae   :  { %5071 = vsyncadd [#allocation4], 4294966528 }
 0x5af   :  { %4959 = vsyncpa [#allocation4], 1 }

</bundles_post_ra>
